<compile_context>
chip_gen: v6e
topology: v6e:2x2x1
jax: 0.10.0
libtpu: 0.0.40
codegen_flags: <defaults>
</compile_context>

<pallas_src>
import functools

import jax
import jax.numpy as jnp
from jax.experimental import pallas as pl
from jax.experimental.pallas import tpu as pltpu

_EPS = 1e-5


# ---------------------------------------------------------------------------
# Hardware-aware knobs
# ---------------------------------------------------------------------------
def _vmem_limit_bytes():
    """Generation-aware scoped-VMEM limit: half of physical capacity, capped at
    64 MiB (v5e/v6e: 128 MiB physical -> 64 MiB; v7x: 64 MiB -> 32 MiB)."""
    try:
        cap = int(pltpu.get_tpu_info().vmem_capacity_bytes)
    except Exception:
        cap = 64 * 1024 * 1024
    return min(cap // 2, 64 * 1024 * 1024)


def _compiler_params():
    return pltpu.CompilerParams(dimension_semantics=("parallel",),
                                vmem_limit_bytes=_vmem_limit_bytes())


def _round_up(x, m):
    return (x + m - 1) // m * m


def _row_tile(M, H, per_row_bytes, fixed_bytes, budget):
    """Largest row tile that (a) is a whole number of images, (b) divides M,
    (c) obeys the sublane rule (multiple of 8 or == M), and (d) keeps the
    double-buffered working set within `budget`.  For small M this returns M
    itself (single block, grid of 1)."""
    cands = [k * H for k in range(1, M // H + 1)
             if M % (k * H) == 0 and ((k * H) == M or (k * H) % 8 == 0)]
    fits = [t for t in cands if fixed_bytes + t * per_row_bytes <= budget]
    return max(fits) if fits else min(cands)


# ---------------------------------------------------------------------------
# Pallas kernels
# ---------------------------------------------------------------------------
def _dual_conv_stats_kernel(a1_ref, a2_ref, b1_ref, b2_ref, bias1_ref, bias2_ref,
                            y1_ref, y2_ref, s1_ref, q1_ref, s2_ref, q2_ref):
    """Pass 1: two convs-as-matmuls + fused bias + one-pass BN partial stats.

    Stats are computed from the f32 accumulator; y1/y2 may be stored narrower
    (bf16) since they are written once and re-read once.
    """
    y1 = jnp.dot(a1_ref[...], b1_ref[...], preferred_element_type=jnp.float32)
    y1 = y1 + bias1_ref[...]
    y2 = jnp.dot(a2_ref[...], b2_ref[...], preferred_element_type=jnp.float32)
    y2 = y2 + bias2_ref[...]
    y1_ref[...] = y1.astype(y1_ref.dtype)
    y2_ref[...] = y2.astype(y2_ref.dtype)
    s1_ref[...] = jnp.sum(y1, axis=0, keepdims=True)[None]
    q1_ref[...] = jnp.sum(y1 * y1, axis=0, keepdims=True)[None]
    s2_ref[...] = jnp.sum(y2, axis=0, keepdims=True)[None]
    q2_ref[...] = jnp.sum(y2 * y2, axis=0, keepdims=True)[None]


def _bn_relu_conv_stats_kernel(y2_ref, a2_ref, c2_ref, b3_ref, bias3_ref,
                               y3_ref, s3_ref, q3_ref, *, img_h, mm_dtype):
    """Pass 2: conv_path = relu(y2*a2+c2) in VMEM, kh-shift im2col via
    pltpu.roll (zero at per-image H boundaries), conv3 as 3 lane-dense MXU
    matmuls + bias + one-pass BN partial stats.  Requires the row tile to hold
    whole images (tm % img_h == 0)."""
    cp = jnp.maximum(y2_ref[...].astype(jnp.float32) * a2_ref[...] + c2_ref[...],
                     0.0)
    tm = cp.shape[0]
    row = jax.lax.broadcasted_iota(jnp.int32, cp.shape, 0) % img_h
    # up[h] = cp[h-1] (zero at h==0 within each image); dn[h] = cp[h+1].
    up = jnp.where(row == 0, 0.0, pltpu.roll(cp, shift=1, axis=0))
    dn = jnp.where(row == img_h - 1, 0.0, pltpu.roll(cp, shift=tm - 1, axis=0))
    y3 = (jnp.dot(up.astype(mm_dtype), b3_ref[0], preferred_element_type=jnp.float32)
          + jnp.dot(cp.astype(mm_dtype), b3_ref[1], preferred_element_type=jnp.float32)
          + jnp.dot(dn.astype(mm_dtype), b3_ref[2], preferred_element_type=jnp.float32)
          + bias3_ref[...])
    y3_ref[...] = y3.astype(y3_ref.dtype)
    s3_ref[...] = jnp.sum(y3, axis=0, keepdims=True)[None]
    q3_ref[...] = jnp.sum(y3 * y3, axis=0, keepdims=True)[None]


def _merge_kernel(y1_ref, y3_ref, a1_ref, c1_ref, a3_ref, c3_ref, o_ref):
    """Pass 3: o = relu(bn1(y1) + bn3(y3)) with BNs as per-(w,co) scale/shift rows."""
    z = (y1_ref[...].astype(jnp.float32) * a1_ref[...] + c1_ref[...]
         + y3_ref[...].astype(jnp.float32) * a3_ref[...] + c3_ref[...])
    o_ref[...] = jnp.maximum(z, 0.0).astype(o_ref.dtype)


# ---------------------------------------------------------------------------
# pallas_call drivers
# ---------------------------------------------------------------------------
def _dual_conv_bias_stats(a1, a2, B1, B2, bias1, bias2, tm, y_dtype):
    M, K = a1.shape
    L = B1.shape[1]
    gm = M // tm
    isz = a1.dtype.itemsize
    ysz = jnp.dtype(y_dtype).itemsize
    cost = pl.CostEstimate(
        flops=4 * M * K * L,
        transcendentals=0,
        bytes_accessed=2 * (M * K + K * L) * isz + 2 * M * L * ysz
        + (4 * gm * L + 2 * L) * 4)
    tile = lambda i: (i, 0)
    full = lambda i: (0, 0)
    stat = lambda i: (i, 0, 0)
    return pl.pallas_call(
        _dual_conv_stats_kernel,
        grid=(gm,),
        in_specs=[pl.BlockSpec((tm, K), tile),
                  pl.BlockSpec((tm, K), tile),
                  pl.BlockSpec((K, L), full),
                  pl.BlockSpec((K, L), full),
                  pl.BlockSpec((1, L), full),
                  pl.BlockSpec((1, L), full)],
        out_specs=(pl.BlockSpec((tm, L), tile),
                   pl.BlockSpec((tm, L), tile),
                   pl.BlockSpec((1, 1, L), stat),
                   pl.BlockSpec((1, 1, L), stat),
                   pl.BlockSpec((1, 1, L), stat),
                   pl.BlockSpec((1, 1, L), stat)),
        out_shape=(jax.ShapeDtypeStruct((M, L), y_dtype),
                   jax.ShapeDtypeStruct((M, L), y_dtype),
                   jax.ShapeDtypeStruct((gm, 1, L), jnp.float32),
                   jax.ShapeDtypeStruct((gm, 1, L), jnp.float32),
                   jax.ShapeDtypeStruct((gm, 1, L), jnp.float32),
                   jax.ShapeDtypeStruct((gm, 1, L), jnp.float32)),
        compiler_params=_compiler_params(),
        cost_estimate=cost,
    )(a1, a2, B1, B2, bias1, bias2)


def _bn_relu_conv_bias_stats(y2, a2_row, c2_row, B3, bias3, tm, img_h,
                             y_dtype, mm_dtype):
    M, L = y2.shape
    gm = M // tm
    kern = functools.partial(_bn_relu_conv_stats_kernel, img_h=img_h,
                             mm_dtype=mm_dtype)
    ysz = jnp.dtype(y_dtype).itemsize
    cost = pl.CostEstimate(
        flops=2 * M * (3 * L) * L + 10 * M * L,
        transcendentals=0,
        bytes_accessed=2 * M * L * ysz + 3 * L * L * jnp.dtype(mm_dtype).itemsize
        + (2 * gm * L + 3 * L) * 4)
    tile = lambda i: (i, 0)
    full = lambda i: (0, 0)
    stat = lambda i: (i, 0, 0)
    return pl.pallas_call(
        kern,
        grid=(gm,),
        in_specs=[pl.BlockSpec((tm, L), tile),
                  pl.BlockSpec((1, L), full),
                  pl.BlockSpec((1, L), full),
                  pl.BlockSpec((3, L, L), lambda i: (0, 0, 0)),
                  pl.BlockSpec((1, L), full)],
        out_specs=(pl.BlockSpec((tm, L), tile),
                   pl.BlockSpec((1, 1, L), stat),
                   pl.BlockSpec((1, 1, L), stat)),
        out_shape=(jax.ShapeDtypeStruct((M, L), y_dtype),
                   jax.ShapeDtypeStruct((gm, 1, L), jnp.float32),
                   jax.ShapeDtypeStruct((gm, 1, L), jnp.float32)),
        compiler_params=_compiler_params(),
        cost_estimate=cost,
        input_output_aliases={0: 0},     # y3 reuses y2's HBM buffer
    )(y2, a2_row, c2_row, B3, bias3)


def _merge(y1, y3, a1, c1, a3, c3, tm):
    M, L = y1.shape
    gm = M // tm
    ysz = y1.dtype.itemsize
    tile = pl.BlockSpec((tm, L), lambda i: (i, 0))
    row = pl.BlockSpec((1, L), lambda i: (0, 0))
    return pl.pallas_call(
        _merge_kernel,
        grid=(gm,),
        in_specs=[tile, tile, row, row, row, row],
        out_specs=tile,
        out_shape=jax.ShapeDtypeStruct((M, L), y1.dtype),
        compiler_params=_compiler_params(),
        cost_estimate=pl.CostEstimate(flops=7 * M * L, transcendentals=0,
                                      bytes_accessed=3 * M * L * ysz + 4 * L * 4),
        input_output_aliases={0: 0},     # merge result reuses y1's HBM buffer
    )(y1, y3, a1, c1, a3, c3)


# ---------------------------------------------------------------------------
# Layout / BN helpers (tiny XLA ops in the wrapper)
# ---------------------------------------------------------------------------
def _im2col_rows(x_nhwc):
    """out[n*H + h, kh*W*C + xw*C + c] = x[n, h + kh - 1, xw, c] (zero when the
    height index is out of range).  Width padding lives in the banded weight."""
    N, H, W, C = x_nhwc.shape
    xp = jnp.pad(x_nhwc, ((0, 0), (1, 1), (0, 0), (0, 0)))
    rows = [xp[:, kh:kh + H].reshape(N, H, W * C) for kh in range(3)]
    return jnp.concatenate(rows, axis=-1).reshape(N * H, 3 * W * C)


def _toeplitz_weight(w_oihw, W):
    """(Cout,Cin,3,3) -> (3*W*Cin, W*Cout) banded matrix B with
    B[kh*W*Cin + xw*Cin + ci, w*Cout + co] = w[co, ci, kh, xw - w + 1] when
    |xw - w| <= 1 (else 0).  _im2col_rows(x) @ B is the 3x3/s1/p1 conv laid
    out as (N*H, W*Cout)."""
    Cout, Cin, KH, KW = w_oihw.shape
    wt = jnp.transpose(w_oihw, (2, 3, 1, 0)).astype(jnp.float32)  # (KH,KW,Cin,Cout)
    B = jnp.zeros((KH, W, Cin, W, Cout), jnp.float32)
    for kw in range(KW):
        band = jnp.eye(W, W, k=1 - kw, dtype=jnp.float32)          # band[xw, w]
        B = B + wt[:, kw][:, None, :, None, :] * band[None, :, None, :, None]
    return B.reshape(KH * W * Cin, W * Cout)


def _pad_cols(a, kp):
    return a if a.shape[1] == kp else jnp.pad(a, ((0, 0), (0, kp - a.shape[1])))


def _pad_rows(b, kp):
    return b if b.shape[0] == kp else jnp.pad(b, ((0, kp - b.shape[0]), (0, 0)))


def _tile_row(v, W):
    """(C,) per-channel vector -> (1, W*C) row matching the (w, co) lane layout."""
    return jnp.tile(v.astype(jnp.float32), W)[None, :]


def _bn_scale_shift(s, q, gamma, beta, W, Cout, count):
    """Reduce per-tile column sums into per-channel scale/shift rows so that
    bn(y) == y * a_row + c_row (training-mode batch stats, biased variance).
    One-pass variance (E[x^2]-mean^2) in f32; fine for fresh-init BN on roughly
    zero-mean activations.  TODO(synk): switch to a centered second pass if
    activations drift far from zero mean (cancellation risk)."""
    colsum = jnp.sum(s, axis=(0, 1)).reshape(W, Cout)
    colsq = jnp.sum(q, axis=(0, 1)).reshape(W, Cout)
    mean = jnp.sum(colsum, axis=0) / count
    var = jnp.maximum(jnp.sum(colsq, axis=0) / count - mean * mean, 0.0)
    inv = gamma.astype(jnp.float32) * jax.lax.rsqrt(var + _EPS)
    a_row = _tile_row(inv, W)
    c_row = _tile_row(beta.astype(jnp.float32) - mean * inv, W)
    return a_row, c_row


# ---------------------------------------------------------------------------
# Channel_reduce forward
# ---------------------------------------------------------------------------
@functools.partial(jax.jit, static_argnames=("matmul_dtype",))
def channel_reduce(x, w1, b1, w2, b2, w3, b3,
                   g1, be1, g2, be2, g3, be3,
                   matmul_dtype=jnp.bfloat16):
    """Forward pass of Channel_reduce (BatchNorms in training mode).

    matmul_dtype: MXU operand and y-intermediate dtype (bf16 default, as
    recommended for v5e/v6e/v7x; float32 gives a tight reference match)."""
    N, Cin, H, W = x.shape
    Cout = w1.shape[0]
    L = W * Cout                 # lane-dense output width (128 for the test shape)
    M = N * H
    count = N * H * W
    mm_dtype = jnp.dtype(matmul_dtype)
    y_dtype = mm_dtype           # y written once / read once -> store at MXU width

    xf = x.astype(jnp.float32)
    x_nhwc = jnp.transpose(xf, (0, 2, 3, 1))
    # 3x3 / stride 1 / pad 1 max-pool with -inf padding (PyTorch semantics).
    mp_nhwc = jax.lax.reduce_window(
        x_nhwc, -jnp.inf, jax.lax.max,
        (1, 3, 3, 1), (1, 1, 1, 1), ((0, 0), (1, 1), (1, 1), (0, 0)))

    K = 3 * W * Cin
    Kp = _round_up(K, 128)       # full 128-lane A vregs / aligned MXU K sweep
    a_mp = _pad_cols(_im2col_rows(mp_nhwc), Kp).astype(mm_dtype)
    a_x = _pad_cols(_im2col_rows(x_nhwc), Kp).astype(mm_dtype)
    B1 = _pad_rows(_toeplitz_weight(w1, W), Kp).astype(mm_dtype)
    B2 = _pad_rows(_toeplitz_weight(w2, W), Kp).astype(mm_dtype)
    # conv3 weight as per-kh (L, L) blocks for the fused pass-2 matmuls.
    B3 = _toeplitz_weight(w3, W).reshape(3, L, L).astype(mm_dtype)

    # VMEM-budget-aware row tiling: whole images per tile, largest that fits
    # (single 32-row block at the test shape -> grid=(1,)).
    isz = mm_dtype.itemsize
    ysz = jnp.dtype(y_dtype).itemsize
    per_row = 2 * (2 * Kp * isz + 2 * L * ysz) + 2 * L * 4
    fixed = 2 * 2 * Kp * L * isz + 6 * L * 4
    budget = _vmem_limit_bytes() * 3 // 4
    tm = _row_tile(M, H, per_row, fixed, budget)

    # Pass 1: conv1(maxpool(x)) & conv2(x), fused bias + BN partial stats.
    y1, y2, s1, q1, s2, q2 = _dual_conv_bias_stats(
        a_mp, a_x, B1, B2, _tile_row(b1, W), _tile_row(b2, W), tm, y_dtype)

    # Pass 2: relu(bn2(y2)) -> in-VMEM kh-shift im2col -> conv3 (+ bias/stats).
    a2r, c2r = _bn_scale_shift(s2, q2, g2, be2, W, Cout, count)
    y3, s3, q3 = _bn_relu_conv_bias_stats(
        y2, a2r, c2r, B3, _tile_row(b3, W), tm, H, y_dtype, mm_dtype)

    # Pass 3: out = relu(bn1(y1) + bn3(y3)).
    a1r, c1r = _bn_scale_shift(s1, q1, g1, be1, W, Cout, count)
    a3r, c3r = _bn_scale_shift(s3, q3, g3, be3, W, Cout, count)
    out_rows = _merge(y1, y3, a1r, c1r, a3r, c3r, tm)

    return jnp.transpose(out_rows.astype(jnp.float32).reshape(N, H, W, Cout),
                         (0, 3, 1, 2))


# ---------------------------------------------------------------------------
# Pure-JAX reference (mirrors PyTorch semantics) for validation
# ---------------------------------------------------------------------------
def channel_reduce_ref(x, w1, b1, w2, b2, w3, b3,
                       g1, be1, g2, be2, g3, be3, cast=None):
    """`cast` optionally quantises conv inputs/weights (mirrors bf16 operands)."""
    cast = (lambda a: a) if cast is None else cast

    def conv(h, w, b):
        y = jax.lax.conv_general_dilated(
            cast(h).astype(jnp.float32), cast(w).astype(jnp.float32),
            window_strides=(1, 1), padding=((1, 1), (1, 1)),
            dimension_numbers=("NCHW", "OIHW", "NCHW"))
        return y + b[None, :, None, None]

    def bn(y, g, be):
        mean = jnp.mean(y, axis=(0, 2, 3), keepdims=True)
        var = jnp.mean((y - mean) ** 2, axis=(0, 2, 3), keepdims=True)
        yn = (y - mean) / jnp.sqrt(var + _EPS)
        return yn * g[None, :, None, None] + be[None, :, None, None]

    mp = jax.lax.reduce_window(
        x, -jnp.inf, jax.lax.max,
        (1, 1, 3, 3), (1, 1, 1, 1), ((0, 0), (0, 0), (1, 1), (1, 1)))
    max_out = bn(conv(mp, w1, b1), g1, be1)
    conv_path = jax.nn.relu(bn(conv(x, w2, b2), g2, be2))
    conv_out = bn(conv(conv_path, w3, b3), g3, be3)
    return jax.nn.relu(max_out + conv_out)


if __name__ == "__main__":
    key = jax.random.PRNGKey(0)
    kx, kw1, kb1, kw2, kb2, kw3, kb3 = jax.random.split(key, 7)

    # Small shapes consistent with the module: batch=2, in_ch=4, out_ch=8, 16x16.
    N, Cin, Cout, H, W = 2, 4, 8, 16, 16
    x = jax.random.normal(kx, (N, Cin, H, W), jnp.float32)

    def conv_init(kw, kb, cout, cin):
        bound = 1.0 / ((cin * 9) ** 0.5)      # nn.Conv2d default init range
        w = jax.random.uniform(kw, (cout, cin, 3, 3), jnp.float32, -bound, bound)
        b = jax.random.uniform(kb, (cout,), jnp.float32, -bound, bound)
        return w, b

    w1, b1 = conv_init(kw1, kb1, Cout, Cin)
    w2, b2 = conv_init(kw2, kb2, Cout, Cin)
    w3, b3 = conv_init(kw3, kb3, Cout, Cout)
    ones = jnp.ones((Cout,), jnp.float32)     # nn.BatchNorm2d defaults
    zeros = jnp.zeros((Cout,), jnp.float32)
    params = (w1, b1, w2, b2, w3, b3, ones, zeros, ones, zeros, ones, zeros)

    # f32 MXU-operand / f32-intermediate path: tight check vs pure-JAX reference.
    out = jax.block_until_ready(
        channel_reduce(x, *params, matmul_dtype=jnp.float32))
    ref = channel_reduce_ref(x, *params)
    assert out.shape == (N, Cout, H, W), out.shape
    err_f32 = float(jnp.max(jnp.abs(out - ref)))
    assert err_f32 < 2e-3, err_f32

    # Default bf16 MXU-operand / bf16-intermediate path (v5e/v6e/v7x): compared
    # against a reference that quantises conv inputs/weights the same way; all
    # BN statistics / elementwise math stay f32 inside the kernels.
    out_bf16 = jax.block_until_ready(channel_reduce(x, *params))
    ref_bf16 = channel_reduce_ref(
        x, *params, cast=lambda a: a.astype(jnp.bfloat16))
    err_bf16 = float(jnp.max(jnp.abs(out_bf16.astype(jnp.float32) - ref_bf16)))
    assert err_bf16 < 1e-1, err_bf16

    print("KERNEL_OK")
</pallas_src>

<mosaic_0001>
module attributes {stable_mosaic.version = 11 : i64} {
  func.func @_dual_conv_stats_kernel(%arg0: i32, %arg1: memref<32x256xf32, #tpu.memory_space<vmem>>, %arg2: memref<32x256xf32, #tpu.memory_space<vmem>>, %arg3: memref<256x128xf32, #tpu.memory_space<vmem>>, %arg4: memref<256x128xf32, #tpu.memory_space<vmem>>, %arg5: memref<1x128xf32, #tpu.memory_space<vmem>>, %arg6: memref<1x128xf32, #tpu.memory_space<vmem>>, %arg7: memref<32x128xf32, #tpu.memory_space<vmem>>, %arg8: memref<32x128xf32, #tpu.memory_space<vmem>>, %arg9: memref<1x1x128xf32, #tpu.memory_space<vmem>>, %arg10: memref<1x1x128xf32, #tpu.memory_space<vmem>>, %arg11: memref<1x1x128xf32, #tpu.memory_space<vmem>>, %arg12: memref<1x1x128xf32, #tpu.memory_space<vmem>>) attributes {dimension_semantics = [#tpu.dimension_semantics<parallel>], iteration_bounds = array<i64: 1>, scalar_prefetch = 0 : i64, scratch_operands = 0 : i64, tpu.core_type = #tpu.core_type<tc>, window_params = [{transform_indices = @transform_0, window_bounds = array<i64: 32, 256>}, {transform_indices = @transform_1, window_bounds = array<i64: 32, 256>}, {pipeline_mode = #tpu.pipeline_mode<synchronous>, transform_indices = @transform_2, window_bounds = array<i64: 256, 128>}, {pipeline_mode = #tpu.pipeline_mode<synchronous>, transform_indices = @transform_3, window_bounds = array<i64: 256, 128>}, {pipeline_mode = #tpu.pipeline_mode<synchronous>, transform_indices = @transform_4, window_bounds = array<i64: 1, 128>}, {pipeline_mode = #tpu.pipeline_mode<synchronous>, transform_indices = @transform_5, window_bounds = array<i64: 1, 128>}, {transform_indices = @transform_6, window_bounds = array<i64: 32, 128>}, {transform_indices = @transform_7, window_bounds = array<i64: 32, 128>}, {transform_indices = @transform_8, window_bounds = array<i64: 1, 1, 128>}, {transform_indices = @transform_9, window_bounds = array<i64: 1, 1, 128>}, {transform_indices = @transform_10, window_bounds = array<i64: 1, 1, 128>}, {transform_indices = @transform_11, window_bounds = array<i64: 1, 1, 128>}]} {
    %c0 = arith.constant 0 : index
    %c0_0 = arith.constant 0 : index
    %0 = vector.load %arg1[%c0, %c0_0] : memref<32x256xf32, #tpu.memory_space<vmem>>, vector<32x256xf32>
    %c0_1 = arith.constant 0 : index
    %c0_2 = arith.constant 0 : index
    %1 = vector.load %arg3[%c0_1, %c0_2] : memref<256x128xf32, #tpu.memory_space<vmem>>, vector<256x128xf32>
    %cst = arith.constant dense<0.000000e+00> : vector<32x128xf32>
    %2 = tpu.matmul %0, %1, %cst {dimension_numbers = #tpu.dot_dimension_numbers<[1], [0], [0], [1], [0, 0, 1, 1], [], []>} : vector<32x256xf32>, vector<256x128xf32>, vector<32x128xf32> -> vector<32x128xf32>
    %c0_3 = arith.constant 0 : index
    %c0_4 = arith.constant 0 : index
    %3 = vector.load %arg5[%c0_3, %c0_4] : memref<1x128xf32, #tpu.memory_space<vmem>>, vector<1x128xf32>
    %4 = vector.broadcast %3 : vector<1x128xf32> to vector<32x128xf32>
    %5 = arith.addf %2, %4 : vector<32x128xf32>
    %c0_5 = arith.constant 0 : index
    %c0_6 = arith.constant 0 : index
    %6 = vector.load %arg2[%c0_5, %c0_6] : memref<32x256xf32, #tpu.memory_space<vmem>>, vector<32x256xf32>
    %c0_7 = arith.constant 0 : index
    %c0_8 = arith.constant 0 : index
    %7 = vector.load %arg4[%c0_7, %c0_8] : memref<256x128xf32, #tpu.memory_space<vmem>>, vector<256x128xf32>
    %cst_9 = arith.constant dense<0.000000e+00> : vector<32x128xf32>
    %8 = tpu.matmul %6, %7, %cst_9 {dimension_numbers = #tpu.dot_dimension_numbers<[1], [0], [0], [1], [0, 0, 1, 1], [], []>} : vector<32x256xf32>, vector<256x128xf32>, vector<32x128xf32> -> vector<32x128xf32>
    %c0_10 = arith.constant 0 : index
    %c0_11 = arith.constant 0 : index
    %9 = vector.load %arg6[%c0_10, %c0_11] : memref<1x128xf32, #tpu.memory_space<vmem>>, vector<1x128xf32>
    %10 = vector.broadcast %9 : vector<1x128xf32> to vector<32x128xf32>
    %11 = arith.addf %8, %10 : vector<32x128xf32>
    %c0_12 = arith.constant 0 : index
    %c0_13 = arith.constant 0 : index
    %12 = vector.load %arg7[%c0_12, %c0_13] : memref<32x128xf32, #tpu.memory_space<vmem>>, vector<32x128xf32>
    tpu.vector_store %arg7[%c0_12, %c0_13], %5 {strides = array<i32>} : memref<32x128xf32, #tpu.memory_space<vmem>>, vector<32x128xf32>,
    %c0_14 = arith.constant 0 : index
    %c0_15 = arith.constant 0 : index
    %13 = vector.load %arg8[%c0_14, %c0_15] : memref<32x128xf32, #tpu.memory_space<vmem>>, vector<32x128xf32>
    tpu.vector_store %arg8[%c0_14, %c0_15], %11 {strides = array<i32>} : memref<32x128xf32, #tpu.memory_space<vmem>>, vector<32x128xf32>,
    %cst_16 = arith.constant dense<0.000000e+00> : vector<128xf32>
    %14 = vector.multi_reduction <add>, %5, %cst_16 [0] : vector<32x128xf32> to vector<128xf32>
    %15 = vector.shape_cast %14 : vector<128xf32> to vector<1x128xf32>
    %16 = vector.shape_cast %15 : vector<1x128xf32> to vector<1x1x128xf32>
    %c0_17 = arith.constant 0 : index
    %c0_18 = arith.constant 0 : index
    %c0_19 = arith.constant 0 : index
    %17 = vector.load %arg9[%c0_17, %c0_18, %c0_19] : memref<1x1x128xf32, #tpu.memory_space<vmem>>, vector<1x1x128xf32>
    tpu.vector_store %arg9[%c0_17, %c0_18, %c0_19], %16 {strides = array<i32>} : memref<1x1x128xf32, #tpu.memory_space<vmem>>, vector<1x1x128xf32>,
    %18 = arith.mulf %5, %5 : vector<32x128xf32>
    %cst_20 = arith.constant dense<0.000000e+00> : vector<128xf32>
    %19 = vector.multi_reduction <add>, %18, %cst_20 [0] : vector<32x128xf32> to vector<128xf32>
    %20 = vector.shape_cast %19 : vector<128xf32> to vector<1x128xf32>
    %21 = vector.shape_cast %20 : vector<1x128xf32> to vector<1x1x128xf32>
    %c0_21 = arith.constant 0 : index
    %c0_22 = arith.constant 0 : index
    %c0_23 = arith.constant 0 : index
    %22 = vector.load %arg10[%c0_21, %c0_22, %c0_23] : memref<1x1x128xf32, #tpu.memory_space<vmem>>, vector<1x1x128xf32>
    tpu.vector_store %arg10[%c0_21, %c0_22, %c0_23], %21 {strides = array<i32>} : memref<1x1x128xf32, #tpu.memory_space<vmem>>, vector<1x1x128xf32>,
    %cst_24 = arith.constant dense<0.000000e+00> : vector<128xf32>
    %23 = vector.multi_reduction <add>, %11, %cst_24 [0] : vector<32x128xf32> to vector<128xf32>
    %24 = vector.shape_cast %23 : vector<128xf32> to vector<1x128xf32>
    %25 = vector.shape_cast %24 : vector<1x128xf32> to vector<1x1x128xf32>
    %c0_25 = arith.constant 0 : index
    %c0_26 = arith.constant 0 : index
    %c0_27 = arith.constant 0 : index
    %26 = vector.load %arg11[%c0_25, %c0_26, %c0_27] : memref<1x1x128xf32, #tpu.memory_space<vmem>>, vector<1x1x128xf32>
    tpu.vector_store %arg11[%c0_25, %c0_26, %c0_27], %25 {strides = array<i32>} : memref<1x1x128xf32, #tpu.memory_space<vmem>>, vector<1x1x128xf32>,
    %27 = arith.mulf %11, %11 : vector<32x128xf32>
    %cst_28 = arith.constant dense<0.000000e+00> : vector<128xf32>
    %28 = vector.multi_reduction <add>, %27, %cst_28 [0] : vector<32x128xf32> to vector<128xf32>
    %29 = vector.shape_cast %28 : vector<128xf32> to vector<1x128xf32>
    %30 = vector.shape_cast %29 : vector<1x128xf32> to vector<1x1x128xf32>
    %c0_29 = arith.constant 0 : index
    %c0_30 = arith.constant 0 : index
    %c0_31 = arith.constant 0 : index
    %31 = vector.load %arg12[%c0_29, %c0_30, %c0_31] : memref<1x1x128xf32, #tpu.memory_space<vmem>>, vector<1x1x128xf32>
    tpu.vector_store %arg12[%c0_29, %c0_30, %c0_31], %30 {strides = array<i32>} : memref<1x1x128xf32, #tpu.memory_space<vmem>>, vector<1x1x128xf32>,
    return
  }
  func.func @transform_0(%arg0: i32) -> (i32, i32) {
    %c0_i32 = arith.constant 0 : i32
    %c0_i32_0 = arith.constant 0 : i32
    return %arg0, %c0_i32 : i32, i32
  }
  func.func @transform_1(%arg0: i32) -> (i32, i32) {
    %c0_i32 = arith.constant 0 : i32
    %c0_i32_0 = arith.constant 0 : i32
    return %arg0, %c0_i32 : i32, i32
  }
  func.func @transform_2(%arg0: i32) -> (i32, i32) {
    %c0_i32 = arith.constant 0 : i32
    %c0_i32_0 = arith.constant 0 : i32
    %c0_i32_1 = arith.constant 0 : i32
    return %c0_i32, %c0_i32_0 : i32, i32
  }
  func.func @transform_3(%arg0: i32) -> (i32, i32) {
    %c0_i32 = arith.constant 0 : i32
    %c0_i32_0 = arith.constant 0 : i32
    %c0_i32_1 = arith.constant 0 : i32
    return %c0_i32, %c0_i32_0 : i32, i32
  }
  func.func @transform_4(%arg0: i32) -> (i32, i32) {
    %c0_i32 = arith.constant 0 : i32
    %c0_i32_0 = arith.constant 0 : i32
    %c0_i32_1 = arith.constant 0 : i32
    return %c0_i32, %c0_i32_0 : i32, i32
  }
  func.func @transform_5(%arg0: i32) -> (i32, i32) {
    %c0_i32 = arith.constant 0 : i32
    %c0_i32_0 = arith.constant 0 : i32
    %c0_i32_1 = arith.constant 0 : i32
    return %c0_i32, %c0_i32_0 : i32, i32
  }
  func.func @transform_6(%arg0: i32) -> (i32, i32) {
    %c0_i32 = arith.constant 0 : i32
    %c0_i32_0 = arith.constant 0 : i32
    return %arg0, %c0_i32 : i32, i32
  }
  func.func @transform_7(%arg0: i32) -> (i32, i32) {
    %c0_i32 = arith.constant 0 : i32
    %c0_i32_0 = arith.constant 0 : i32
    return %arg0, %c0_i32 : i32, i32
  }
  func.func @transform_8(%arg0: i32) -> (i32, i32, i32) {
    %c0_i32 = arith.constant 0 : i32
    %c0_i32_0 = arith.constant 0 : i32
    %c0_i32_1 = arith.constant 0 : i32
    return %arg0, %c0_i32, %c0_i32_0 : i32, i32, i32
  }
  func.func @transform_9(%arg0: i32) -> (i32, i32, i32) {
    %c0_i32 = arith.constant 0 : i32
    %c0_i32_0 = arith.constant 0 : i32
    %c0_i32_1 = arith.constant 0 : i32
    return %arg0, %c0_i32, %c0_i32_0 : i32, i32, i32
  }
  func.func @transform_10(%arg0: i32) -> (i32, i32, i32) {
    %c0_i32 = arith.constant 0 : i32
    %c0_i32_0 = arith.constant 0 : i32
    %c0_i32_1 = arith.constant 0 : i32
    return %arg0, %c0_i32, %c0_i32_0 : i32, i32, i32
  }
  func.func @transform_11(%arg0: i32) -> (i32, i32, i32) {
    %c0_i32 = arith.constant 0 : i32
    %c0_i32_0 = arith.constant 0 : i32
    %c0_i32_1 = arith.constant 0 : i32
    return %arg0, %c0_i32, %c0_i32_0 : i32, i32, i32
  }
}

module attributes {stable_mosaic.version = 11 : i64} {
  func.func @_bn_relu_conv_stats_kernel(%arg0: i32, %arg1: memref<32x128xf32, #tpu.memory_space<vmem>>, %arg2: memref<1x128xf32, #tpu.memory_space<vmem>>, %arg3: memref<1x128xf32, #tpu.memory_space<vmem>>, %arg4: memref<3x128x128xf32, #tpu.memory_space<vmem>>, %arg5: memref<1x128xf32, #tpu.memory_space<vmem>>, %arg6: memref<32x128xf32, #tpu.memory_space<vmem>>, %arg7: memref<1x1x128xf32, #tpu.memory_space<vmem>>, %arg8: memref<1x1x128xf32, #tpu.memory_space<vmem>>) attributes {dimension_semantics = [#tpu.dimension_semantics<parallel>], iteration_bounds = array<i64: 1>, scalar_prefetch = 0 : i64, scratch_operands = 0 : i64, tpu.core_type = #tpu.core_type<tc>, window_params = [{transform_indices = @transform_0, window_bounds = array<i64: 32, 128>}, {pipeline_mode = #tpu.pipeline_mode<synchronous>, transform_indices = @transform_1, window_bounds = array<i64: 1, 128>}, {pipeline_mode = #tpu.pipeline_mode<synchronous>, transform_indices = @transform_2, window_bounds = array<i64: 1, 128>}, {pipeline_mode = #tpu.pipeline_mode<synchronous>, transform_indices = @transform_3, window_bounds = array<i64: 3, 128, 128>}, {pipeline_mode = #tpu.pipeline_mode<synchronous>, transform_indices = @transform_4, window_bounds = array<i64: 1, 128>}, {transform_indices = @transform_5, window_bounds = array<i64: 32, 128>}, {transform_indices = @transform_6, window_bounds = array<i64: 1, 1, 128>}, {transform_indices = @transform_7, window_bounds = array<i64: 1, 1, 128>}]} {
    %c0 = arith.constant 0 : index
    %c0_0 = arith.constant 0 : index
    %0 = vector.load %arg1[%c0, %c0_0] : memref<32x128xf32, #tpu.memory_space<vmem>>, vector<32x128xf32>
    %c0_1 = arith.constant 0 : index
    %c0_2 = arith.constant 0 : index
    %1 = vector.load %arg2[%c0_1, %c0_2] : memref<1x128xf32, #tpu.memory_space<vmem>>, vector<1x128xf32>
    %2 = vector.broadcast %1 : vector<1x128xf32> to vector<32x128xf32>
    %3 = arith.mulf %0, %2 : vector<32x128xf32>
    %c0_3 = arith.constant 0 : index
    %c0_4 = arith.constant 0 : index
    %4 = vector.load %arg3[%c0_3, %c0_4] : memref<1x128xf32, #tpu.memory_space<vmem>>, vector<1x128xf32>
    %5 = vector.broadcast %4 : vector<1x128xf32> to vector<32x128xf32>
    %6 = arith.addf %3, %5 : vector<32x128xf32>
    %cst = arith.constant 0.000000e+00 : f32
    %7 = vector.broadcast %cst : f32 to vector<32x128xf32>
    %8 = arith.maximumf %6, %7 : vector<32x128xf32>
    %9 = tpu.iota {dimensions = array<i32: 0>} : vector<32x128xi32>
    %c16_i32 = arith.constant 16 : i32
    %c0_i32 = arith.constant 0 : i32
    %10 = arith.cmpi eq, %c16_i32, %c0_i32 : i32
    %c1_i32 = arith.constant 1 : i32
    %11 = arith.select %10, %c1_i32, %c16_i32 : i32
    %12 = vector.broadcast %11 : i32 to vector<32x128xi32>
    %13 = arith.remsi %9, %12 : vector<32x128xi32>
    %c0_i32_5 = arith.constant 0 : i32
    %14 = vector.broadcast %c0_i32_5 : i32 to vector<32x128xi32>
    %15 = arith.cmpi ne, %13, %14 : vector<32x128xi32>
    %c0_i32_6 = arith.constant 0 : i32
    %16 = vector.broadcast %c0_i32_6 : i32 to vector<32x128xi32>
    %17 = arith.cmpi slt, %13, %16 : vector<32x128xi32>
    %c0_i32_7 = arith.constant 0 : i32
    %18 = arith.cmpi slt, %11, %c0_i32_7 : i32
    %19 = vector.broadcast %18 : i1 to vector<32x128xi1>
    %20 = vector.broadcast %19 : vector<32x128xi1> to vector<32x128xi1>
    %21 = arith.xori %17, %20 : vector<32x128xi1>
    %22 = arith.andi %21, %15 : vector<32x128xi1>
    %23 = vector.broadcast %11 : i32 to vector<32x128xi32>
    %24 = arith.addi %13, %23 : vector<32x128xi32>
    %25 = arith.select %22, %24, %13 : vector<32x128xi1>, vector<32x128xi32>
    %c0_i32_8 = arith.constant 0 : i32
    %26 = vector.broadcast %c0_i32_8 : i32 to vector<32x128xi32>
    %27 = arith.cmpi eq, %25, %26 : vector<32x128xi32>
    %c1_i32_9 = arith.constant 1 : i32
    %28 = tpu.dynamic_rotate %8 by %c1_i32_9 dim 0 : vector<32x128xf32>, i32 -> vector<32x128xf32>
    %cst_10 = arith.constant 0.000000e+00 : f32
    %29 = vector.broadcast %cst_10 : f32 to vector<32x128xf32>
    %30 = arith.select %27, %29, %28 : vector<32x128xi1>, vector<32x128xf32>
    %c15_i32 = arith.constant 15 : i32
    %31 = vector.broadcast %c15_i32 : i32 to vector<32x128xi32>
    %32 = arith.cmpi eq, %25, %31 : vector<32x128xi32>
    %c31_i32 = arith.constant 31 : i32
    %33 = tpu.dynamic_rotate %8 by %c31_i32 dim 0 : vector<32x128xf32>, i32 -> vector<32x128xf32>
    %cst_11 = arith.constant 0.000000e+00 : f32
    %34 = vector.broadcast %cst_11 : f32 to vector<32x128xf32>
    %35 = arith.select %32, %34, %33 : vector<32x128xi1>, vector<32x128xf32>
    %c0_12 = arith.constant 0 : index
    %c0_13 = arith.constant 0 : index
    %c0_14 = arith.constant 0 : index
    %36 = vector.load %arg4[%c0_12, %c0_13, %c0_14] : memref<3x128x128xf32, #tpu.memory_space<vmem>>, vector<1x128x128xf32>
    %37 = vector.shape_cast %36 : vector<1x128x128xf32> to vector<128x128xf32>
    %cst_15 = arith.constant dense<0.000000e+00> : vector<32x128xf32>
    %38 = tpu.matmul %30, %37, %cst_15 {dimension_numbers = #tpu.dot_dimension_numbers<[1], [0], [0], [1], [0, 0, 1, 1], [], []>} : vector<32x128xf32>, vector<128x128xf32>, vector<32x128xf32> -> vector<32x128xf32>
    %c1 = arith.constant 1 : index
    %c0_16 = arith.constant 0 : index
    %c0_17 = arith.constant 0 : index
    %39 = vector.load %arg4[%c1, %c0_16, %c0_17] : memref<3x128x128xf32, #tpu.memory_space<vmem>>, vector<1x128x128xf32>
    %40 = vector.shape_cast %39 : vector<1x128x128xf32> to vector<128x128xf32>
    %cst_18 = arith.constant dense<0.000000e+00> : vector<32x128xf32>
    %41 = tpu.matmul %8, %40, %cst_18 {dimension_numbers = #tpu.dot_dimension_numbers<[1], [0], [0], [1], [0, 0, 1, 1], [], []>} : vector<32x128xf32>, vector<128x128xf32>, vector<32x128xf32> -> vector<32x128xf32>
    %42 = arith.addf %38, %41 : vector<32x128xf32>
    %c2 = arith.constant 2 : index
    %c0_19 = arith.constant 0 : index
    %c0_20 = arith.constant 0 : index
    %43 = vector.load %arg4[%c2, %c0_19, %c0_20] : memref<3x128x128xf32, #tpu.memory_space<vmem>>, vector<1x128x128xf32>
    %44 = vector.shape_cast %43 : vector<1x128x128xf32> to vector<128x128xf32>
    %cst_21 = arith.constant dense<0.000000e+00> : vector<32x128xf32>
    %45 = tpu.matmul %35, %44, %cst_21 {dimension_numbers = #tpu.dot_dimension_numbers<[1], [0], [0], [1], [0, 0, 1, 1], [], []>} : vector<32x128xf32>, vector<128x128xf32>, vector<32x128xf32> -> vector<32x128xf32>
    %46 = arith.addf %42, %45 : vector<32x128xf32>
    %c0_22 = arith.constant 0 : index
    %c0_23 = arith.constant 0 : index
    %47 = vector.load %arg5[%c0_22, %c0_23] : memref<1x128xf32, #tpu.memory_space<vmem>>, vector<1x128xf32>
    %48 = vector.broadcast %47 : vector<1x128xf32> to vector<32x128xf32>
    %49 = arith.addf %46, %48 : vector<32x128xf32>
    %c0_24 = arith.constant 0 : index
    %c0_25 = arith.constant 0 : index
    %50 = vector.load %arg6[%c0_24, %c0_25] : memref<32x128xf32, #tpu.memory_space<vmem>>, vector<32x128xf32>
    tpu.vector_store %arg6[%c0_24, %c0_25], %49 {strides = array<i32>} : memref<32x128xf32, #tpu.memory_space<vmem>>, vector<32x128xf32>,
    %cst_26 = arith.constant dense<0.000000e+00> : vector<128xf32>
    %51 = vector.multi_reduction <add>, %49, %cst_26 [0] : vector<32x128xf32> to vector<128xf32>
    %52 = vector.shape_cast %51 : vector<128xf32> to vector<1x128xf32>
    %53 = vector.shape_cast %52 : vector<1x128xf32> to vector<1x1x128xf32>
    %c0_27 = arith.constant 0 : index
    %c0_28 = arith.constant 0 : index
    %c0_29 = arith.constant 0 : index
    %54 = vector.load %arg7[%c0_27, %c0_28, %c0_29] : memref<1x1x128xf32, #tpu.memory_space<vmem>>, vector<1x1x128xf32>
    tpu.vector_store %arg7[%c0_27, %c0_28, %c0_29], %53 {strides = array<i32>} : memref<1x1x128xf32, #tpu.memory_space<vmem>>, vector<1x1x128xf32>,
    %55 = arith.mulf %49, %49 : vector<32x128xf32>
    %cst_30 = arith.constant dense<0.000000e+00> : vector<128xf32>
    %56 = vector.multi_reduction <add>, %55, %cst_30 [0] : vector<32x128xf32> to vector<128xf32>
    %57 = vector.shape_cast %56 : vector<128xf32> to vector<1x128xf32>
    %58 = vector.shape_cast %57 : vector<1x128xf32> to vector<1x1x128xf32>
    %c0_31 = arith.constant 0 : index
    %c0_32 = arith.constant 0 : index
    %c0_33 = arith.constant 0 : index
    %59 = vector.load %arg8[%c0_31, %c0_32, %c0_33] : memref<1x1x128xf32, #tpu.memory_space<vmem>>, vector<1x1x128xf32>
    tpu.vector_store %arg8[%c0_31, %c0_32, %c0_33], %58 {strides = array<i32>} : memref<1x1x128xf32, #tpu.memory_space<vmem>>, vector<1x1x128xf32>,
    return
  }
  func.func @transform_0(%arg0: i32) -> (i32, i32) {
    %c0_i32 = arith.constant 0 : i32
    %c0_i32_0 = arith.constant 0 : i32
    return %arg0, %c0_i32 : i32, i32
  }
  func.func @transform_1(%arg0: i32) -> (i32, i32) {
    %c0_i32 = arith.constant 0 : i32
    %c0_i32_0 = arith.constant 0 : i32
    %c0_i32_1 = arith.constant 0 : i32
    return %c0_i32, %c0_i32_0 : i32, i32
  }
  func.func @transform_2(%arg0: i32) -> (i32, i32) {
    %c0_i32 = arith.constant 0 : i32
    %c0_i32_0 = arith.constant 0 : i32
    %c0_i32_1 = arith.constant 0 : i32
    return %c0_i32, %c0_i32_0 : i32, i32
  }
  func.func @transform_3(%arg0: i32) -> (i32, i32, i32) {
    %c0_i32 = arith.constant 0 : i32
    %c0_i32_0 = arith.constant 0 : i32
    %c0_i32_1 = arith.constant 0 : i32
    %c0_i32_2 = arith.constant 0 : i32
    return %c0_i32, %c0_i32_0, %c0_i32_1 : i32, i32, i32
  }
  func.func @transform_4(%arg0: i32) -> (i32, i32) {
    %c0_i32 = arith.constant 0 : i32
    %c0_i32_0 = arith.constant 0 : i32
    %c0_i32_1 = arith.constant 0 : i32
    return %c0_i32, %c0_i32_0 : i32, i32
  }
  func.func @transform_5(%arg0: i32) -> (i32, i32) {
    %c0_i32 = arith.constant 0 : i32
    %c0_i32_0 = arith.constant 0 : i32
    return %arg0, %c0_i32 : i32, i32
  }
  func.func @transform_6(%arg0: i32) -> (i32, i32, i32) {
    %c0_i32 = arith.constant 0 : i32
    %c0_i32_0 = arith.constant 0 : i32
    %c0_i32_1 = arith.constant 0 : i32
    return %arg0, %c0_i32, %c0_i32_0 : i32, i32, i32
  }
  func.func @transform_7(%arg0: i32) -> (i32, i32, i32) {
    %c0_i32 = arith.constant 0 : i32
    %c0_i32_0 = arith.constant 0 : i32
    %c0_i32_1 = arith.constant 0 : i32
    return %arg0, %c0_i32, %c0_i32_0 : i32, i32, i32
  }
}

module attributes {stable_mosaic.version = 11 : i64} {
  func.func @_merge_kernel(%arg0: i32, %arg1: memref<32x128xf32, #tpu.memory_space<vmem>>, %arg2: memref<32x128xf32, #tpu.memory_space<vmem>>, %arg3: memref<1x128xf32, #tpu.memory_space<vmem>>, %arg4: memref<1x128xf32, #tpu.memory_space<vmem>>, %arg5: memref<1x128xf32, #tpu.memory_space<vmem>>, %arg6: memref<1x128xf32, #tpu.memory_space<vmem>>, %arg7: memref<32x128xf32, #tpu.memory_space<vmem>>) attributes {dimension_semantics = [#tpu.dimension_semantics<parallel>], iteration_bounds = array<i64: 1>, scalar_prefetch = 0 : i64, scratch_operands = 0 : i64, tpu.core_type = #tpu.core_type<tc>, window_params = [{transform_indices = @transform_0, window_bounds = array<i64: 32, 128>}, {transform_indices = @transform_1, window_bounds = array<i64: 32, 128>}, {pipeline_mode = #tpu.pipeline_mode<synchronous>, transform_indices = @transform_2, window_bounds = array<i64: 1, 128>}, {pipeline_mode = #tpu.pipeline_mode<synchronous>, transform_indices = @transform_3, window_bounds = array<i64: 1, 128>}, {pipeline_mode = #tpu.pipeline_mode<synchronous>, transform_indices = @transform_4, window_bounds = array<i64: 1, 128>}, {pipeline_mode = #tpu.pipeline_mode<synchronous>, transform_indices = @transform_5, window_bounds = array<i64: 1, 128>}, {transform_indices = @transform_6, window_bounds = array<i64: 32, 128>}]} {
    %c0 = arith.constant 0 : index
    %c0_0 = arith.constant 0 : index
    %0 = vector.load %arg1[%c0, %c0_0] : memref<32x128xf32, #tpu.memory_space<vmem>>, vector<32x128xf32>
    %c0_1 = arith.constant 0 : index
    %c0_2 = arith.constant 0 : index
    %1 = vector.load %arg3[%c0_1, %c0_2] : memref<1x128xf32, #tpu.memory_space<vmem>>, vector<1x128xf32>
    %2 = vector.broadcast %1 : vector<1x128xf32> to vector<32x128xf32>
    %3 = arith.mulf %0, %2 : vector<32x128xf32>
    %c0_3 = arith.constant 0 : index
    %c0_4 = arith.constant 0 : index
    %4 = vector.load %arg4[%c0_3, %c0_4] : memref<1x128xf32, #tpu.memory_space<vmem>>, vector<1x128xf32>
    %5 = vector.broadcast %4 : vector<1x128xf32> to vector<32x128xf32>
    %6 = arith.addf %3, %5 : vector<32x128xf32>
    %c0_5 = arith.constant 0 : index
    %c0_6 = arith.constant 0 : index
    %7 = vector.load %arg2[%c0_5, %c0_6] : memref<32x128xf32, #tpu.memory_space<vmem>>, vector<32x128xf32>
    %c0_7 = arith.constant 0 : index
    %c0_8 = arith.constant 0 : index
    %8 = vector.load %arg5[%c0_7, %c0_8] : memref<1x128xf32, #tpu.memory_space<vmem>>, vector<1x128xf32>
    %9 = vector.broadcast %8 : vector<1x128xf32> to vector<32x128xf32>
    %10 = arith.mulf %7, %9 : vector<32x128xf32>
    %11 = arith.addf %6, %10 : vector<32x128xf32>
    %c0_9 = arith.constant 0 : index
    %c0_10 = arith.constant 0 : index
    %12 = vector.load %arg6[%c0_9, %c0_10] : memref<1x128xf32, #tpu.memory_space<vmem>>, vector<1x128xf32>
    %13 = vector.broadcast %12 : vector<1x128xf32> to vector<32x128xf32>
    %14 = arith.addf %11, %13 : vector<32x128xf32>
    %cst = arith.constant 0.000000e+00 : f32
    %15 = vector.broadcast %cst : f32 to vector<32x128xf32>
    %16 = arith.maximumf %14, %15 : vector<32x128xf32>
    %c0_11 = arith.constant 0 : index
    %c0_12 = arith.constant 0 : index
    %17 = vector.load %arg7[%c0_11, %c0_12] : memref<32x128xf32, #tpu.memory_space<vmem>>, vector<32x128xf32>
    tpu.vector_store %arg7[%c0_11, %c0_12], %16 {strides = array<i32>} : memref<32x128xf32, #tpu.memory_space<vmem>>, vector<32x128xf32>,
    return
  }
  func.func @transform_0(%arg0: i32) -> (i32, i32) {
    %c0_i32 = arith.constant 0 : i32
    %c0_i32_0 = arith.constant 0 : i32
    return %arg0, %c0_i32 : i32, i32
  }
  func.func @transform_1(%arg0: i32) -> (i32, i32) {
    %c0_i32 = arith.constant 0 : i32
    %c0_i32_0 = arith.constant 0 : i32
    return %arg0, %c0_i32 : i32, i32
  }
  func.func @transform_2(%arg0: i32) -> (i32, i32) {
    %c0_i32 = arith.constant 0 : i32
    %c0_i32_0 = arith.constant 0 : i32
    %c0_i32_1 = arith.constant 0 : i32
    return %c0_i32, %c0_i32_0 : i32, i32
  }
  func.func @transform_3(%arg0: i32) -> (i32, i32) {
    %c0_i32 = arith.constant 0 : i32
    %c0_i32_0 = arith.constant 0 : i32
    %c0_i32_1 = arith.constant 0 : i32
    return %c0_i32, %c0_i32_0 : i32, i32
  }
  func.func @transform_4(%arg0: i32) -> (i32, i32) {
    %c0_i32 = arith.constant 0 : i32
    %c0_i32_0 = arith.constant 0 : i32
    %c0_i32_1 = arith.constant 0 : i32
    return %c0_i32, %c0_i32_0 : i32, i32
  }
  func.func @transform_5(%arg0: i32) -> (i32, i32) {
    %c0_i32 = arith.constant 0 : i32
    %c0_i32_0 = arith.constant 0 : i32
    %c0_i32_1 = arith.constant 0 : i32
    return %c0_i32, %c0_i32_0 : i32, i32
  }
  func.func @transform_6(%arg0: i32) -> (i32, i32) {
    %c0_i32 = arith.constant 0 : i32
    %c0_i32_0 = arith.constant 0 : i32
    return %arg0, %c0_i32 : i32, i32
  }
}

</mosaic_0001>

<bundles_post_ra>
// kernel: tile.48
= control target key start
LH: loop header
LB: loop body
LE: loop exit
PB: predicated region body
PF: predicated region fallthrough
CT: control target
= control target key end

     0   :  { %s28_s0 = inlined_call_operand.vmem [shape: f32[8], index: 0, kind: input, shape index: {}]   ;;  %s29_s1 = inlined_call_operand.vmem [shape: f32[16,8], index: 1, kind: output, shape index: {}]  }
   0x1   :  { %v4_v0 = vld [vmem:[%s28_s0] ss:$0 sm:$0xff] }
   0x2   :  { %5 = vst [vmem:[%s29_s1] sm:$0xff] %v4_v0  ;;  %8 = vst [vmem:[%s29_s1 + $0x8] sm:$0xff] %v4_v0 }

// kernel: tile.49
= control target key start
LH: loop header
LB: loop body
LE: loop exit
PB: predicated region body
PF: predicated region fallthrough
CT: control target
= control target key end

     0   :  { %s133_s10 = smov 120   ;;  %s134_s11 = smov 104   ;;  %vm3_vm0 = vcmask 64512   ;;  %vm9_vm1 = vcmask 1048512   ;;  %vm15_vm2 = vcmask 982912   ;;  %vm21_vm3 = vcmask 917312   ;;  %s209_s0 = inlined_call_operand.vmem [shape: f32[16,8], index: 0, kind: input, shape index: {}]   ;;  %s210_s1 = inlined_call_operand.vmem [shape: f32[1,128], index: 1, kind: output, shape index: {}]  }
   0x1   :  { %v103_v0 = vld [vmem:[%s209_s0 + $0xf] sm:$0x1]   ;;  %v105_v1 = vld [vmem:[%s209_s0 + $0xd] sm:$0x1]   ;;  %v104_v2 = vld [vmem:[%s209_s0 + $0xe] sm:$0x1]  }
   0x2   :  { %7 = vrot.lane.b32.xlu0 %v103_v0, %s133_s10  ;;  %19 = vrot.lane.b32.xlu1 %v105_v1, %s134_s11  ;;  %v106_v3 = vld [vmem:[%s209_s0 + $0xc] sm:$0x1]   ;;  %s135_s16 = smov 112   ;;  %s136_s17 = smov 96   ;;  %v107_v4 = vld [vmem:[%s209_s0 + $0xb] sm:$0x1]  }
   0x3   :  { %v108_v5 = vld [vmem:[%s209_s0 + $0xa] sm:$0x1]   ;;  %v2_v6 = vld [vmem:[%s209_s0] sm:$0x1]   ;;  %s137_s24 = smov 88   ;;  %s138_s25 = smov 80  }
   0x4   :  { %4 = vst.msk [vmem:[#allocation0] sm:$0x1] %vm3_vm0, %v2_v6   ;;  %v109_v7 = vld [vmem:[%s209_s0 + $0x9] sm:$0x1]   ;;  %v110_v8 = vld [vmem:[%s209_s0 + $0x8] sm:$0x1]  }
   0x5   :  { %s139_s30 = smov 72   ;;  %s140_s2 = smov 64   ;;  %v111_v9 = vld [vmem:[%s209_s0 + $0x7] sm:$0x1]   ;;  %v112_v10 = vld [vmem:[%s209_s0 + $0x6] sm:$0x1]  }
   0x6   :  { %13 = vrot.lane.b32.xlu0 %v104_v2, %s135_s16  ;;  %25 = vrot.lane.b32.xlu1 %v106_v3, %s136_s17  ;;  %s141_s7 = smov 56   ;;  %s142_s8 = smov 48   ;;  %v113_v11 = vld [vmem:[%s209_s0 + $0x5] sm:$0x1]   ;;  %v114_v12 = vld [vmem:[%s209_s0 + $0x4] sm:$0x1]  }
   0x7   :  { %s143_s13 = smov 40   ;;  %s144_s14 = smov 32   ;;  %v115_v13 = vld [vmem:[%s209_s0 + $0x3] sm:$0x1]   ;;  %v116_v14 = vld [vmem:[%s209_s0 + $0x2] sm:$0x1]  }
   0x8   :  { %s145_s19 = smov 24   ;;  %s146_s20 = smov 16   ;;  %v117_v15 = vld [vmem:[%s209_s0 + $0x1] sm:$0x1]   ;;  %vm27_vm4 = vcmask 851712   ;;  %vm33_vm5 = vcmask 786112  }
   0x9   :  { %s147_s0 = smov 8   ;;  %vm39_vm6 = vcmask 720512   ;;  %vm45_vm7 = vcmask 654912   ;;  %vm51_vm8 = vcmask 589312   ;;  %vm57_vm9 = vcmask 523712  }
   0xa   :  { %31 = vrot.lane.b32.xlu0 %v107_v4, %s137_s24  ;;  %37 = vrot.lane.b32.xlu1 %v108_v5, %s138_s25  ;;  %vm63_vm10 = vcmask 458112   ;;  %vm69_vm11 = vcmask 392512   ;;  %vm75_vm12 = vcmask 326912   ;;  %vm81_vm13 = vcmask 261312  }
   0xb   :  { %vm87_vm14 = vcmask 195712   ;;  %vm93_vm15 = vcmask 130112  }
   0xe   :  { %43 = vrot.lane.b32.xlu0 %v109_v7, %s139_s30  ;;  %49 = vrot.lane.b32.xlu1 %v110_v8, %s140_s2 }
  0x12   :  { %55 = vrot.lane.b32.xlu0 %v111_v9, %s141_s7  ;;  %61 = vrot.lane.b32.xlu1 %v112_v10, %s142_s8 }
  0x16   :  { %67 = vrot.lane.b32.xlu0 %v113_v11, %s143_s13  ;;  %73 = vrot.lane.b32.xlu1 %v114_v12, %s144_s14 }
  0x1a   :  { %79 = vrot.lane.b32.xlu0 %v115_v13, %s145_s19  ;;  %85 = vrot.lane.b32.xlu1 %v116_v14, %s146_s20 }
  0x1e   :  { %91 = vrot.lane.b32.xlu0 %v117_v15, %s147_s0 }
  0x74   :  { %v8_v16 = vpop.permute.xlu0 %7   ;;  %v20_v17 = vpop.permute.xlu1 %19  }
  0x75   :  { %10 = vst.msk [vmem:[#allocation0] sm:$0x1] %vm9_vm1, %v8_v16  }
  0x78   :  { %v14_v18 = vpop.permute.xlu0 %13   ;;  %v26_v19 = vpop.permute.xlu1 %25  }
  0x79   :  { %16 = vst.msk [vmem:[#allocation0] sm:$0x1] %vm15_vm2, %v14_v18  }
  0x7a   :  { %22 = vst.msk [vmem:[#allocation0] sm:$0x1] %vm21_vm3, %v20_v17  }
  0x7b   :  { %28 = vst.msk [vmem:[#allocation0] sm:$0x1] %vm27_vm4, %v26_v19  }
  0x7c   :  { %v32_v20 = vpop.permute.xlu0 %31   ;;  %v38_v21 = vpop.permute.xlu1 %37  }
  0x7d   :  { %34 = vst.msk [vmem:[#allocation0] sm:$0x1] %vm33_vm5, %v32_v20  }
  0x7e   :  { %40 = vst.msk [vmem:[#allocation0] sm:$0x1] %vm39_vm6, %v38_v21  }
  0x80   :  { %v44_v22 = vpop.permute.xlu0 %43   ;;  %v50_v23 = vpop.permute.xlu1 %49  }
  0x81   :  { %46 = vst.msk [vmem:[#allocation0] sm:$0x1] %vm45_vm7, %v44_v22  }
  0x82   :  { %52 = vst.msk [vmem:[#allocation0] sm:$0x1] %vm51_vm8, %v50_v23  }
  0x84   :  { %v56_v24 = vpop.permute.xlu0 %55   ;;  %v62_v25 = vpop.permute.xlu1 %61  }
  0x85   :  { %58 = vst.msk [vmem:[#allocation0] sm:$0x1] %vm57_vm9, %v56_v24  }
  0x86   :  { %64 = vst.msk [vmem:[#allocation0] sm:$0x1] %vm63_vm10, %v62_v25  }
  0x88   :  { %v68_v26 = vpop.permute.xlu0 %67   ;;  %v74_v27 = vpop.permute.xlu1 %73  }
  0x89   :  { %70 = vst.msk [vmem:[#allocation0] sm:$0x1] %vm69_vm11, %v68_v26  }
  0x8a   :  { %76 = vst.msk [vmem:[#allocation0] sm:$0x1] %vm75_vm12, %v74_v27  }
  0x8c   :  { %v80_v28 = vpop.permute.xlu0 %79   ;;  %v86_v29 = vpop.permute.xlu1 %85  }
  0x8d   :  { %82 = vst.msk [vmem:[#allocation0] sm:$0x1] %vm81_vm13, %v80_v28  }
  0x8e   :  { %88 = vst.msk [vmem:[#allocation0] sm:$0x1] %vm87_vm14, %v86_v29  }
  0x90   :  { %v92_v30 = vpop.permute.xlu0 %91  }
  0x91   :  { %94 = vst.msk [vmem:[#allocation0] sm:$0x1] %vm93_vm15, %v92_v30  }
  0x98   :  { %v99_v31 = vld [vmem:[#allocation0] sm:$0x1] }
  0x99   :  { %102 = vst [vmem:[%s210_s1] sm:$0x1] %v99_v31 }

// kernel: channel_reduce.3
= control target key start
LH: loop header
LB: loop body
LE: loop exit
PB: predicated region body
PF: predicated region fallthrough
CT: control target
= control target key end

     0   :  { %s805_s2 = inlined_call_operand.vmem [shape: f32[256,128], index: 2, kind: input, shape index: {}]   ;;  %s806_s3 = inlined_call_operand.vmem [shape: f32[256,128], index: 3, kind: input, shape index: {}]   ;;  %s807_s0 = inlined_call_operand.vmem [shape: f32[32,256], index: 0, kind: input, shape index: {}]   ;;  %s808_s1 = inlined_call_operand.vmem [shape: f32[32,256], index: 1, kind: input, shape index: {}]   ;;  %s809_s4 = inlined_call_operand.vmem [shape: f32[1,128], index: 4, kind: input, shape index: {}]   ;;  %s810_s5 = inlined_call_operand.vmem [shape: f32[1,128], index: 5, kind: input, shape index: {}]   ;;  %s811_s6 = inlined_call_operand.vmem [shape: f32[32,128], index: 6, kind: output, shape index: {0}]   ;;  %s812_s7 = inlined_call_operand.vmem [shape: f32[32,128], index: 7, kind: output, shape index: {1}]   ;;  %s813_s8 = inlined_call_operand.vmem [shape: f32[1,1,128], index: 8, kind: output, shape index: {2}]   ;;  %s814_s10 = inlined_call_operand.vmem [shape: f32[1,1,128], index: 10, kind: output, shape index: {4}]   ;;  %s815_s9 = inlined_call_operand.vmem [shape: f32[1,1,128], index: 9, kind: output, shape index: {3}]   ;;  %s816_s11 = inlined_call_operand.vmem [shape: f32[1,1,128], index: 11, kind: output, shape index: {5}]  }
   0x1   :  { %v68_v0 = vld [vmem:[%s805_s2 + $0xf8] sm:$0xff]  ;;  %v67_v4 = vld [vmem:[%s805_s2 + $0xf0] sm:$0xff]  ;;  %v66_v8 = vld [vmem:[%s805_s2 + $0xe8] sm:$0xff] }
   0x2   :  { %v200_v1 = vld [vmem:[%s806_s3 + $0xf8] sm:$0xff]  ;;  %375 = vmatprep.subr.mxu0 %v68_v0  ;;  %v199_v5 = vld [vmem:[%s806_s3 + $0xf0] sm:$0xff]  ;;  %v198_v9 = vld [vmem:[%s806_s3 + $0xe8] sm:$0xff] }
   0x3   :  { %v52_v2 = vld [vmem:[%s805_s2 + $0x78] sm:$0xff]  ;;  %419 = vmatprep.subr.mxu1 %v200_v1  ;;  %v51_v6 = vld [vmem:[%s805_s2 + $0x70] sm:$0xff]  ;;  %v50_v10 = vld [vmem:[%s805_s2 + $0x68] sm:$0xff] }
   0x4   :  { %v184_v3 = vld [vmem:[%s806_s3 + $0x78] sm:$0xff]  ;;  %376 = vmatpush3.msra.mxu0 %v52_v2  ;;  %v183_v7 = vld [vmem:[%s806_s3 + $0x70] sm:$0xff]  ;;  %v182_v11 = vld [vmem:[%s806_s3 + $0x68] sm:$0xff] }
   0x5   :  { %420 = vmatpush3.msra.mxu1 %v184_v3  ;;  %377 = vmatprep.subr.mxu0 %v67_v4  ;;  %v65_v12 = vld [vmem:[%s805_s2 + $0xe0] sm:$0xff]  ;;  %v64_v16 = vld [vmem:[%s805_s2 + $0xd8] sm:$0xff]  ;;  %v63_v20 = vld [vmem:[%s805_s2 + $0xd0] sm:$0xff] }
   0x6   :  { %421 = vmatprep.subr.mxu1 %v199_v5  ;;  %378 = vmatpush3.msra.mxu0 %v51_v6  ;;  %v197_v13 = vld [vmem:[%s806_s3 + $0xe0] sm:$0xff]  ;;  %v196_v17 = vld [vmem:[%s806_s3 + $0xd8] sm:$0xff]  ;;  %v195_v21 = vld [vmem:[%s806_s3 + $0xd0] sm:$0xff] }
   0x7   :  { %422 = vmatpush3.msra.mxu1 %v183_v7  ;;  %379 = vmatprep.subr.mxu0 %v66_v8  ;;  %v49_v14 = vld [vmem:[%s805_s2 + $0x60] sm:$0xff]  ;;  %v48_v18 = vld [vmem:[%s805_s2 + $0x58] sm:$0xff]  ;;  %v47_v22 = vld [vmem:[%s805_s2 + $0x50] sm:$0xff] }
   0x8   :  { %423 = vmatprep.subr.mxu1 %v198_v9  ;;  %v181_v15 = vld [vmem:[%s806_s3 + $0x60] sm:$0xff]  ;;  %380 = vmatpush3.msra.mxu0 %v50_v10  ;;  %v180_v19 = vld [vmem:[%s806_s3 + $0x58] sm:$0xff]  ;;  %v179_v23 = vld [vmem:[%s806_s3 + $0x50] sm:$0xff] }
   0x9   :  { %424 = vmatpush3.msra.mxu1 %v182_v11  ;;  %381 = vmatprep.subr.mxu0 %v65_v12  ;;  %v62_v24 = vld [vmem:[%s805_s2 + $0xc8] sm:$0xff]  ;;  %v61_v28 = vld [vmem:[%s805_s2 + $0xc0] sm:$0xff]  ;;  %v60_v32 = vld [vmem:[%s805_s2 + $0xb8] sm:$0xff] }
   0xa   :  { %425 = vmatprep.subr.mxu1 %v197_v13  ;;  %382 = vmatpush3.msra.mxu0 %v49_v14  ;;  %v194_v25 = vld [vmem:[%s806_s3 + $0xc8] sm:$0xff]  ;;  %v193_v29 = vld [vmem:[%s806_s3 + $0xc0] sm:$0xff]  ;;  %v192_v33 = vld [vmem:[%s806_s3 + $0xb8] sm:$0xff] }
   0xb   :  { %426 = vmatpush3.msra.mxu1 %v181_v15  ;;  %383 = vmatprep.subr.mxu0 %v64_v16  ;;  %v46_v26 = vld [vmem:[%s805_s2 + $0x48] sm:$0xff]  ;;  %v45_v30 = vld [vmem:[%s805_s2 + $0x40] sm:$0xff]  ;;  %v44_v34 = vld [vmem:[%s805_s2 + $0x38] sm:$0xff] }
   0xc   :  { %427 = vmatprep.subr.mxu1 %v196_v17  ;;  %384 = vmatpush3.msra.mxu0 %v48_v18  ;;  %v178_v27 = vld [vmem:[%s806_s3 + $0x48] sm:$0xff]  ;;  %v177_v31 = vld [vmem:[%s806_s3 + $0x40] sm:$0xff]  ;;  %v176_v35 = vld [vmem:[%s806_s3 + $0x38] sm:$0xff] }
   0xd   :  { %428 = vmatpush3.msra.mxu1 %v180_v19  ;;  %385 = vmatprep.subr.mxu0 %v63_v20  ;;  %v59_v36 = vld [vmem:[%s805_s2 + $0xb0] sm:$0xff]  ;;  %v58_v40 = vld [vmem:[%s805_s2 + $0xa8] sm:$0xff]  ;;  %v57_v44 = vld [vmem:[%s805_s2 + $0xa0] sm:$0xff] }
   0xe   :  { %429 = vmatprep.subr.mxu1 %v195_v21  ;;  %386 = vmatpush3.msra.mxu0 %v47_v22  ;;  %v191_v37 = vld [vmem:[%s806_s3 + $0xb0] sm:$0xff]  ;;  %v190_v41 = vld [vmem:[%s806_s3 + $0xa8] sm:$0xff]  ;;  %v189_v45 = vld [vmem:[%s806_s3 + $0xa0] sm:$0xff] }
   0xf   :  { %430 = vmatpush3.msra.mxu1 %v179_v23  ;;  %387 = vmatprep.subr.mxu0 %v62_v24  ;;  %v43_v38 = vld [vmem:[%s805_s2 + $0x30] sm:$0xff]  ;;  %v42_v42 = vld [vmem:[%s805_s2 + $0x28] sm:$0xff]  ;;  %v41_v46 = vld [vmem:[%s805_s2 + $0x20] sm:$0xff] }
  0x10   :  { %431 = vmatprep.subr.mxu1 %v194_v25  ;;  %388 = vmatpush3.msra.mxu0 %v46_v26  ;;  %v175_v39 = vld [vmem:[%s806_s3 + $0x30] sm:$0xff]  ;;  %v174_v43 = vld [vmem:[%s806_s3 + $0x28] sm:$0xff]  ;;  %v173_v47 = vld [vmem:[%s806_s3 + $0x20] sm:$0xff] }
  0x11   :  { %432 = vmatpush3.msra.mxu1 %v178_v27  ;;  %389 = vmatprep.subr.mxu0 %v61_v28  ;;  %v56_v48 = vld [vmem:[%s805_s2 + $0x98] sm:$0xff]  ;;  %v55_v52 = vld [vmem:[%s805_s2 + $0x90] sm:$0xff]  ;;  %v54_v56 = vld [vmem:[%s805_s2 + $0x88] sm:$0xff] }
  0x12   :  { %433 = vmatprep.subr.mxu1 %v193_v29  ;;  %390 = vmatpush3.msra.mxu0 %v45_v30  ;;  %v188_v49 = vld [vmem:[%s806_s3 + $0x98] sm:$0xff]  ;;  %v187_v53 = vld [vmem:[%s806_s3 + $0x90] sm:$0xff]  ;;  %v186_v57 = vld [vmem:[%s806_s3 + $0x88] sm:$0xff] }
  0x13   :  { %434 = vmatpush3.msra.mxu1 %v177_v31  ;;  %391 = vmatprep.subr.mxu0 %v60_v32  ;;  %v40_v50 = vld [vmem:[%s805_s2 + $0x18] sm:$0xff]  ;;  %v39_v54 = vld [vmem:[%s805_s2 + $0x10] sm:$0xff]  ;;  %v38_v58 = vld [vmem:[%s805_s2 + $0x8] sm:$0xff] }
  0x14   :  { %435 = vmatprep.subr.mxu1 %v192_v33  ;;  %392 = vmatpush3.msra.mxu0 %v44_v34  ;;  %v172_v51 = vld [vmem:[%s806_s3 + $0x18] sm:$0xff]  ;;  %v171_v55 = vld [vmem:[%s806_s3 + $0x10] sm:$0xff]  ;;  %v170_v59 = vld [vmem:[%s806_s3 + $0x8] sm:$0xff] }
  0x15   :  { %436 = vmatpush3.msra.mxu1 %v176_v35  ;;  %393 = vmatprep.subr.mxu0 %v59_v36  ;;  %v53_v60 = vld [vmem:[%s805_s2 + $0x80] sm:$0xff]  ;;  %v30_v63 = vld [vmem:[%s807_s0 + $0x8] sm:$0xff]  ;;  %v32_v4 = vld [vmem:[%s807_s0 + $0x18] sm:$0xff] }
  0x16   :  { %437 = vmatprep.subr.mxu1 %v191_v37  ;;  %394 = vmatpush3.msra.mxu0 %v43_v38  ;;  %v185_v61 = vld [vmem:[%s806_s3 + $0x80] sm:$0xff]  ;;  %v162_v1 = vld [vmem:[%s808_s1 + $0x8] sm:$0xff]  ;;  %v164_v5 = vld [vmem:[%s808_s1 + $0x18] sm:$0xff] }
  0x17   :  { %438 = vmatpush3.msra.mxu1 %v175_v39  ;;  %395 = vmatprep.subr.mxu0 %v58_v40  ;;  %v37_v62 = vld [vmem:[%s805_s2] sm:$0xff]  ;;  %v31_v6 = vld [vmem:[%s807_s0 + $0x10] sm:$0xff]  ;;  %v34_v8 = vld [vmem:[%s807_s0 + $0x28] sm:$0xff] }
  0x18   :  { %439 = vmatprep.subr.mxu1 %v190_v41  ;;  %396 = vmatpush3.msra.mxu0 %v42_v42  ;;  %v169_v0 = vld [vmem:[%s806_s3] sm:$0xff]  ;;  %v163_v7 = vld [vmem:[%s808_s1 + $0x10] sm:$0xff]  ;;  %v166_v9 = vld [vmem:[%s808_s1 + $0x28] sm:$0xff] }
  0x19   :  { %440 = vmatpush3.msra.mxu1 %v174_v43  ;;  %397 = vmatprep.subr.mxu0 %v57_v44  ;;  %v29_v2 = vld [vmem:[%s807_s0] sm:$0xff]  ;;  %v36_v12 = vld [vmem:[%s807_s0 + $0x38] sm:$0xff]  ;;  %v35_v14 = vld [vmem:[%s807_s0 + $0x30] sm:$0xff] }
  0x1a   :  { %441 = vmatprep.subr.mxu1 %v189_v45  ;;  %398 = vmatpush3.msra.mxu0 %v41_v46  ;;  %v161_v3 = vld [vmem:[%s808_s1] sm:$0xff]  ;;  %v168_v13 = vld [vmem:[%s808_s1 + $0x38] sm:$0xff]  ;;  %v167_v15 = vld [vmem:[%s808_s1 + $0x30] sm:$0xff] }
  0x1b   :  { %442 = vmatpush3.msra.mxu1 %v173_v47  ;;  %399 = vmatprep.subr.mxu0 %v56_v48  ;;  %v33_v10 = vld [vmem:[%s807_s0 + $0x20] sm:$0xff] }
  0x1c   :  { %443 = vmatprep.subr.mxu1 %v188_v49  ;;  %400 = vmatpush3.msra.mxu0 %v40_v50  ;;  %v165_v11 = vld [vmem:[%s808_s1 + $0x20] sm:$0xff] }
  0x1d   :  { %444 = vmatpush3.msra.mxu1 %v172_v51  ;;  %401 = vmatprep.subr.mxu0 %v55_v52  ;;  %v373_v18 = vld [vmem:[%s809_s4] ss:$0 sm:$0xff] }
  0x1e   :  { %445 = vmatprep.subr.mxu1 %v187_v53  ;;  %402 = vmatpush3.msra.mxu0 %v39_v54  ;;  %v374_v20 = vld [vmem:[%s810_s5] ss:$0 sm:$0xff] }
  0x1f   :  { %446 = vmatpush3.msra.mxu1 %v171_v55  ;;  %403 = vmatprep.subr.mxu0 %v54_v56 }
  0x20   :  { %447 = vmatprep.subr.mxu1 %v186_v57  ;;  %404 = vmatpush3.msra.mxu0 %v38_v58 }
  0x21   :  { %448 = vmatpush3.msra.mxu1 %v170_v59  ;;  %405 = vmatprep.subr.mxu0 %v53_v60 }
  0x22   :  { %449 = vmatprep.subr.mxu1 %v185_v61  ;;  %406 = vmatpush3.msra.mxu0 %v37_v62 }
  0x23   :  { %140 = vmatprep.mubr.f32.mxu0 %v30_v63  ;;  %450 = vmatpush3.msra.mxu1 %v169_v0 }
  0x24   :  { %272 = vmatprep.mubr.f32.mxu1 %v162_v1  ;;  %141 = vmatmul.mubr.f32.vlgmr.msra.gmra.mxu0 %v29_v2 }
  0x25   :  { %273 = vmatmul.mubr.f32.vlgmr.msra.gmra.mxu1 %v161_v3  ;;  %145 = vmatprep.mubr.f32.mxu0 %v32_v4 }
  0x26   :  { %277 = vmatprep.mubr.f32.mxu1 %v164_v5 }
  0x28   :  { %146 = vmatmul.mubr.f32.gmra.mxu0 %v31_v6 }
  0x29   :  { %278 = vmatmul.mubr.f32.gmra.mxu1 %v163_v7  ;;  %150 = vmatprep.mubr.f32.mxu0 %v34_v8 }
  0x2a   :  { %282 = vmatprep.mubr.f32.mxu1 %v166_v9 }
  0x2c   :  { %151 = vmatmul.mubr.f32.gmra.mxu0 %v33_v10 }
  0x2d   :  { %283 = vmatmul.mubr.f32.gmra.mxu1 %v165_v11  ;;  %155 = vmatprep.mubr.f32.mxu0 %v36_v12 }
  0x2e   :  { %287 = vmatprep.mubr.f32.mxu1 %v168_v13 }
  0x30   :  { %156 = vmatmul.mubr.f32.gmra.mxu0 %v35_v14 }
  0x31   :  { %288 = vmatmul.mubr.f32.gmra.mxu1 %v167_v15 }
  0xe4   :  { %v407_v16 = vpop.f32.mrf.mxu0 }
  0xe5   :  { %v451_v17 = vpop.f32.mrf.mxu1 }
  0xe6   :  { %v408_v19 = vpop.f32.mrf.mxu0 }
  0xe7   :  { %v452_v21 = vpop.f32.mrf.mxu1  ;;  %v409_v22 = vadd.f32 %v408_v19, %v407_v16 }
  0xe8   :  { %v453_v23 = vadd.f32 %v452_v21, %v451_v17  ;;  %v410_v24 = vpop.f32.mrf.mxu0 }
  0xe9   :  { %v454_v25 = vpop.f32.mrf.mxu1  ;;  %v143_v26 = vadd.f32 %v409_v22, %v373_v18 }
  0xea   :  { %v275_v27 = vadd.f32 %v453_v23, %v374_v20  ;;  %v411_v28 = vpop.f32.mrf.mxu0 }
  0xeb   :  { %v455_v29 = vpop.f32.mrf.mxu1  ;;  %293 = vst [vmem:[%s811_s6] sm:$0xff] %v143_v26  ;;  %v412_v30 = vadd.f32 %v411_v28, %v410_v24  ;;  %v311_v44 = vmul.f32 %v143_v26, %v143_v26 }
  0xec   :  { %297 = vst [vmem:[%s812_s7] sm:$0xff] %v275_v27  ;;  %v456_v31 = vadd.f32 %v455_v29, %v454_v25  ;;  %v413_v32 = vpop.f32.mrf.mxu0  ;;  %v335_v45 = vmul.f32 %v275_v27, %v275_v27 }
  0xed   :  { %v457_v33 = vpop.f32.mrf.mxu1  ;;  %v148_v34 = vadd.f32 %v412_v30, %v373_v18 }
  0xee   :  { %v280_v35 = vadd.f32 %v456_v31, %v374_v20  ;;  %v414_v36 = vpop.f32.mrf.mxu0 }
  0xef   :  { %v458_v37 = vpop.f32.mrf.mxu1  ;;  %294 = vst [vmem:[%s811_s6 + $0x8] sm:$0xff] %v148_v34  ;;  %v312_v38 = vmul.f32 %v148_v34, %v148_v34  ;;  %v415_v40 = vadd.f32 %v414_v36, %v413_v32  ;;  %v301_v50 = vadd.f32 %v148_v34, %v143_v26 }
  0xf0   :  { %298 = vst [vmem:[%s812_s7 + $0x8] sm:$0xff] %v280_v35  ;;  %v336_v39 = vmul.f32 %v280_v35, %v280_v35  ;;  %v459_v41 = vadd.f32 %v458_v37, %v457_v33  ;;  %v416_v42 = vpop.f32.mrf.mxu0  ;;  %v325_v51 = vadd.f32 %v280_v35, %v275_v27 }
  0xf1   :  { %v460_v43 = vpop.f32.mrf.mxu1  ;;  %v153_v46 = vadd.f32 %v415_v40, %v373_v18  ;;  %v315_v54 = vadd.f32 %v312_v38, %v311_v44 }
  0xf2   :  { %v285_v47 = vadd.f32 %v459_v41, %v374_v20  ;;  %v417_v48 = vpop.f32.mrf.mxu0  ;;  %v339_v55 = vadd.f32 %v336_v39, %v335_v45 }
  0xf3   :  { %v461_v49 = vpop.f32.mrf.mxu1  ;;  %v418_v52 = vadd.f32 %v417_v48, %v416_v42  ;;  %295 = vst [vmem:[%s811_s6 + $0x10] sm:$0xff] %v153_v46  ;;  %v313_v56 = vmul.f32 %v153_v46, %v153_v46  ;;  %v302_v58 = vadd.f32 %v301_v50, %v153_v46 }
  0xf4   :  { %v462_v53 = vadd.f32 %v461_v49, %v460_v43  ;;  %299 = vst [vmem:[%s812_s7 + $0x10] sm:$0xff] %v285_v47  ;;  %v337_v57 = vmul.f32 %v285_v47, %v285_v47  ;;  %v326_v59 = vadd.f32 %v325_v51, %v285_v47 }
  0xf5   :  { %v158_v60 = vadd.f32 %v418_v52, %v373_v18  ;;  %v316_v62 = vadd.f32 %v315_v54, %v313_v56 }
  0xf6   :  { %v290_v61 = vadd.f32 %v462_v53, %v374_v20  ;;  %v340_v63 = vadd.f32 %v339_v55, %v337_v57 }
  0xf7   :  { %296 = vst [vmem:[%s811_s6 + $0x18] sm:$0xff] %v158_v60  ;;  %v303_v0 = vadd.f32 %v302_v58, %v158_v60  ;;  %v314_v1 = vmul.f32 %v158_v60, %v158_v60 }
  0xf8   :  { %300 = vst [vmem:[%s812_s7 + $0x18] sm:$0xff] %v290_v61  ;;  %v327_v2 = vadd.f32 %v326_v59, %v290_v61  ;;  %v338_v3 = vmul.f32 %v290_v61, %v290_v61 }
  0xf9   :  { %v304_v4 = vrot.slane %v303_v0, 4  ;;  %v317_v5 = vadd.f32 %v316_v62, %v314_v1 }
  0xfa   :  { %v328_v6 = vrot.slane %v327_v2, 4  ;;  %v341_v7 = vadd.f32 %v340_v63, %v338_v3 }
  0xfb   :  { %v305_v8 = vadd.f32 %v304_v4, %v303_v0  ;;  %v318_v9 = vrot.slane %v317_v5, 4 }
  0xfc   :  { %v329_v10 = vadd.f32 %v328_v6, %v327_v2  ;;  %v342_v11 = vrot.slane %v341_v7, 4 }
  0xfd   :  { %v306_v12 = vrot.slane %v305_v8, 2  ;;  %v319_v13 = vadd.f32 %v318_v9, %v317_v5 }
  0xfe   :  { %v330_v14 = vrot.slane %v329_v10, 2  ;;  %v343_v15 = vadd.f32 %v342_v11, %v341_v7 }
  0xff   :  { %v307_v16 = vadd.f32 %v306_v12, %v305_v8  ;;  %v320_v17 = vrot.slane %v319_v13, 2 }
 0x100   :  { %v331_v18 = vadd.f32 %v330_v14, %v329_v10  ;;  %v344_v19 = vrot.slane %v343_v15, 2 }
 0x101   :  { %v308_v20 = vrot.slane %v307_v16, 1  ;;  %v321_v21 = vadd.f32 %v320_v17, %v319_v13 }
 0x102   :  { %v332_v22 = vrot.slane %v331_v18, 1  ;;  %v345_v23 = vadd.f32 %v344_v19, %v343_v15 }
 0x103   :  { %v309_v24 = vadd.f32 %v308_v20, %v307_v16  ;;  %v322_v25 = vrot.slane %v321_v21, 1 }
 0x104   :  { %v333_v26 = vadd.f32 %v332_v22, %v331_v18  ;;  %v346_v27 = vrot.slane %v345_v23, 1 }
 0x105   :  { %310 = vst [vmem:[%s813_s8] sm:$0x1] %v309_v24  ;;  %v323_v28 = vadd.f32 %v322_v25, %v321_v21 }
 0x106   :  { %334 = vst [vmem:[%s814_s10] sm:$0x1] %v333_v26  ;;  %v347_v29 = vadd.f32 %v346_v27, %v345_v23 }
 0x107   :  { %324 = vst [vmem:[%s815_s9] sm:$0x1] %v323_v28 }
 0x108   :  { %348 = vst [vmem:[%s816_s11] sm:$0x1] %v347_v29 }

// kernel: channel_reduce.4
= control target key start
LH: loop header
LB: loop body
LE: loop exit
PB: predicated region body
PF: predicated region fallthrough
CT: control target
= control target key end

     0   :  { %v53_v32 = vlaneseq  ;;  %s1040_s3 = inlined_call_operand.vmem [shape: f32[3,128,128], index: 3, kind: input, shape index: {}]   ;;  %s1041_s0 = inlined_call_operand.vmem [shape: f32[32,128], index: 0, kind: input, shape index: {}, may-alias: {0,5}]   ;;  %s1042_s1 = inlined_call_operand.vmem [shape: f32[1,128], index: 1, kind: input, shape index: {}]   ;;  %s1043_s2 = inlined_call_operand.vmem [shape: f32[1,128], index: 2, kind: input, shape index: {}]   ;;  %s1044_s4 = inlined_call_operand.vmem [shape: f32[1,128], index: 4, kind: input, shape index: {}]   ;;  %s1045_s5 = inlined_call_operand.vmem [shape: f32[32,128], index: 5, kind: output, shape index: {0}, may-alias: {0,5}]   ;;  %s1046_s6 = inlined_call_operand.vmem [shape: f32[1,1,128], index: 6, kind: output, shape index: {1}]   ;;  %s1047_s7 = inlined_call_operand.vmem [shape: f32[1,1,128], index: 7, kind: output, shape index: {2}]  }
   0x1   :  { %v517_v0 = vld [vmem:[%s1040_s3 + $0xf8] sm:$0xff]  ;;  %v516_v2 = vld [vmem:[%s1040_s3 + $0xf0] sm:$0xff]  ;;  %v515_v4 = vld [vmem:[%s1040_s3 + $0xe8] sm:$0xff] }
   0x2   :  { %v155_v1 = vld [vmem:[%s1040_s3 + $0x78] sm:$0xff]  ;;  %607 = vmatprep.subr.mxu0 %v517_v0  ;;  %v154_v3 = vld [vmem:[%s1040_s3 + $0x70] sm:$0xff]  ;;  %v153_v5 = vld [vmem:[%s1040_s3 + $0x68] sm:$0xff]  ;;  %v900_v40 = vshrl.u32 %v53_v32, 7 }
   0x3   :  { %645 = vmatprep.subr.mxu1 %v155_v1  ;;  %608 = vmatpush3.msra.mxu0 %v517_v0  ;;  %v514_v6 = vld [vmem:[%s1040_s3 + $0xe0] sm:$0xff]  ;;  %v513_v8 = vld [vmem:[%s1040_s3 + $0xd8] sm:$0xff]  ;;  %v512_v10 = vld [vmem:[%s1040_s3 + $0xd0] sm:$0xff] }
   0x4   :  { %646 = vmatpush3.msra.mxu1 %v155_v1  ;;  %609 = vmatprep.subr.mxu0 %v516_v2  ;;  %v152_v7 = vld [vmem:[%s1040_s3 + $0x60] sm:$0xff]  ;;  %v151_v9 = vld [vmem:[%s1040_s3 + $0x58] sm:$0xff]  ;;  %v150_v11 = vld [vmem:[%s1040_s3 + $0x50] sm:$0xff]  ;;  %v62_v46 = vand.u32 15, %v900_v40  ;;  %vm114_vm0 = vcmp.lt.s32.totalorder %v900_v40, 1  ;;  %vm131_vm3 = vcmp.lt.s32.totalorder %v900_v40, 7 }
   0x5   :  { %647 = vmatprep.subr.mxu1 %v154_v3  ;;  %610 = vmatpush3.msra.mxu0 %v516_v2  ;;  %v511_v12 = vld [vmem:[%s1040_s3 + $0xc8] sm:$0xff]  ;;  %v23_v14 = vld [vmem:[%s1041_s0] sm:$0xff]  ;;  %v26_v16 = vld [vmem:[%s1041_s0 + $0x18] sm:$0xff] }
   0x6   :  { %648 = vmatpush3.msra.mxu1 %v154_v3  ;;  %611 = vmatprep.subr.mxu0 %v515_v4  ;;  %v149_v13 = vld [vmem:[%s1040_s3 + $0x48] sm:$0xff]  ;;  %v841_v15 = vld [vmem:[%s1042_s1] ss:$0 sm:$0xff]  ;;  %v509_v20 = vld [vmem:[%s1040_s3 + $0xb8] sm:$0xff]  ;;  %vm543_vm1 = vcmp.ne.s32.totalorder %v62_v46, 0  ;;  %v56_v3 = vadd.s32 16, %v900_v40 }
   0x7   :  { %649 = vmatprep.subr.mxu1 %v153_v5  ;;  %612 = vmatpush3.msra.mxu0 %v515_v4  ;;  %v510_v17 = vld [vmem:[%s1040_s3 + $0xc0] sm:$0xff]  ;;  %v24_v19 = vld [vmem:[%s1041_s0 + $0x8] sm:$0xff]  ;;  %v147_v21 = vld [vmem:[%s1040_s3 + $0x38] sm:$0xff]  ;;  %v34_v22 = vmul.f32 %v841_v15, %v23_v14  ;;  %v37_v23 = vmul.f32 %v841_v15, %v26_v16 }
   0x8   :  { %650 = vmatpush3.msra.mxu1 %v153_v5  ;;  %613 = vmatprep.subr.mxu0 %v514_v6  ;;  %v148_v18 = vld [vmem:[%s1040_s3 + $0x40] sm:$0xff]  ;;  %v35_v25 = vmul.f32 %v841_v15, %v24_v19  ;;  %v508_v26 = vld [vmem:[%s1040_s3 + $0xb0] sm:$0xff]  ;;  %v507_v28 = vld [vmem:[%s1040_s3 + $0xa8] sm:$0xff] }
   0x9   :  { %651 = vmatprep.subr.mxu1 %v152_v7  ;;  %614 = vmatpush3.msra.mxu0 %v514_v6  ;;  %v866_v24 = vld [vmem:[%s1043_s2] ss:$0 sm:$0xff]  ;;  %v146_v27 = vld [vmem:[%s1040_s3 + $0x30] sm:$0xff]  ;;  %v145_v29 = vld [vmem:[%s1040_s3 + $0x28] sm:$0xff]  ;;  %v76_v6 = vand.u32 15, %v56_v3 }
   0xa   :  { %652 = vmatpush3.msra.mxu1 %v152_v7  ;;  %615 = vmatprep.subr.mxu0 %v513_v8  ;;  %v45_v30 = vadd.f32 %v866_v24, %v34_v22  ;;  %v48_v31 = vadd.f32 %v866_v24, %v37_v23  ;;  %v46_v33 = vadd.f32 %v866_v24, %v35_v25  ;;  %v506_v34 = vld [vmem:[%s1040_s3 + $0xa0] sm:$0xff]  ;;  %v505_v36 = vld [vmem:[%s1040_s3 + $0x98] sm:$0xff]  ;;  %v504_v42 = vld [vmem:[%s1040_s3 + $0x90] sm:$0xff] }
   0xb   :  { %653 = vmatprep.subr.mxu1 %v151_v9  ;;  %616 = vmatpush3.msra.mxu0 %v513_v8  ;;  %v144_v35 = vld [vmem:[%s1040_s3 + $0x20] sm:$0xff]  ;;  %v143_v37 = vld [vmem:[%s1040_s3 + $0x18] sm:$0xff]  ;;  %v142_v43 = vld [vmem:[%s1040_s3 + $0x10] sm:$0xff]  ;;  %vm544_vm2 = vcmp.ne.s32.totalorder %v76_v6, 0 }
   0xc   :  { %654 = vmatpush3.msra.mxu1 %v151_v9  ;;  %617 = vmatprep.subr.mxu0 %v512_v10  ;;  %v896_v38 = vmax.f32 %v45_v30, 0.0  ;;  %v898_v39 = vmax.f32 %v48_v31, 0.0  ;;  %v902_v41 = vmax.f32 %v46_v33, 0.0  ;;  %v503_v44 = vld [vmem:[%s1040_s3 + $0x88] sm:$0xff]  ;;  %v502_v50 = vld [vmem:[%s1040_s3 + $0x80] sm:$0xff]  ;;  %v537_v54 = vld [vmem:[%s1040_s3 + $0x178] sm:$0xff] }
   0xd   :  { %655 = vmatprep.subr.mxu1 %v150_v11  ;;  %618 = vmatpush3.msra.mxu0 %v512_v10  ;;  %v141_v45 = vld [vmem:[%s1040_s3 + $0x8] sm:$0xff]  ;;  %v140_v51 = vld [vmem:[%s1040_s3] sm:$0xff]  ;;  %v536_v55 = vld [vmem:[%s1040_s3 + $0x170] sm:$0xff] }
   0xe   :  { %656 = vmatpush3.msra.mxu1 %v150_v11  ;;  %619 = vmatprep.subr.mxu0 %v511_v12  ;;  %v110_v47 = vrot.slane %v896_v38, 7  ;;  %v113_v48 = vrot.slane %v898_v39, 7  ;;  %v111_v49 = vrot.slane %v902_v41, 7  ;;  %v535_v56 = vld [vmem:[%s1040_s3 + $0x168] sm:$0xff]  ;;  %v534_v57 = vld [vmem:[%s1040_s3 + $0x160] sm:$0xff]  ;;  %v25_v58 = vld [vmem:[%s1041_s0 + $0x10] sm:$0xff] }
   0xf   :  { %657 = vmatprep.subr.mxu1 %v149_v13  ;;  %620 = vmatpush3.msra.mxu0 %v511_v12  ;;  %v533_v59 = vld [vmem:[%s1040_s3 + $0x158] sm:$0xff]  ;;  %v36_v60 = vmul.f32 %v841_v15, %v25_v58  ;;  %v532_v61 = vld [vmem:[%s1040_s3 + $0x150] sm:$0xff]  ;;  %v531_v62 = vld [vmem:[%s1040_s3 + $0x148] sm:$0xff]  ;;  %v55_v12 = vadd.s32 8, %v900_v40  ;;  %v127_v16 = vrot.slane %v896_v38, 1  ;;  %v130_v19 = vrot.slane %v898_v39, 1 }
  0x10   :  { %658 = vmatpush3.msra.mxu1 %v149_v13  ;;  %621 = vmatprep.subr.mxu0 %v510_v17  ;;  %v118_v52 = vsel %vm114_vm0, %v113_v48, %v110_v47  ;;  %v117_v53 = vsel %vm114_vm0, %v110_v47, %v111_v49  ;;  %v530_v0 = vld [vmem:[%s1040_s3 + $0x140] sm:$0xff]  ;;  %v529_v1 = vld [vmem:[%s1040_s3 + $0x138] sm:$0xff]  ;;  %v528_v4 = vld [vmem:[%s1040_s3 + $0x130] sm:$0xff]  ;;  %v57_v13 = vadd.s32 24, %v900_v40 }
  0x11   :  { %659 = vmatprep.subr.mxu1 %v148_v18  ;;  %622 = vmatpush3.msra.mxu0 %v510_v17  ;;  %v47_v63 = vadd.f32 %v866_v24, %v36_v60  ;;  %v527_v5 = vld [vmem:[%s1040_s3 + $0x128] sm:$0xff]  ;;  %v526_v8 = vld [vmem:[%s1040_s3 + $0x120] sm:$0xff]  ;;  %v525_v9 = vld [vmem:[%s1040_s3 + $0x118] sm:$0xff]  ;;  %v128_v17 = vrot.slane %v902_v41, 1 }
  0x12   :  { %660 = vmatpush3.msra.mxu1 %v148_v18  ;;  %623 = vmatprep.subr.mxu0 %v509_v20  ;;  %v524_v14 = vld [vmem:[%s1040_s3 + $0x110] sm:$0xff]  ;;  %v523_v15 = vld [vmem:[%s1040_s3 + $0x108] sm:$0xff]  ;;  %v522_v22 = vld [vmem:[%s1040_s3 + $0x100] sm:$0xff] }
  0x13   :  { %661 = vmatprep.subr.mxu1 %v147_v21  ;;  %624 = vmatpush3.msra.mxu0 %v509_v20  ;;  %v969_v2 = vmax.f32 %v47_v63, 0.0  ;;  %v69_v20 = vand.u32 15, %v55_v12  ;;  %v134_v23 = vsel %vm131_vm3, %v127_v16, %v128_v17 }
  0x14   :  { %662 = vmatpush3.msra.mxu1 %v147_v21  ;;  %625 = vmatprep.subr.mxu0 %v508_v26  ;;  %v83_v21 = vand.u32 15, %v57_v13 }
  0x15   :  { %663 = vmatprep.subr.mxu1 %v146_v27  ;;  %626 = vmatpush3.msra.mxu0 %v508_v26  ;;  %v112_v7 = vrot.slane %v969_v2, 7  ;;  %v129_v18 = vrot.slane %v969_v2, 1  ;;  %vm545_vm4 = vcmp.ne.s32.totalorder %v69_v20, 15  ;;  %v135_v26 = vsel %vm131_vm3, %v130_v19, %v127_v16 }
  0x16   :  { %664 = vmatpush3.msra.mxu1 %v146_v27  ;;  %627 = vmatprep.subr.mxu0 %v507_v28  ;;  %vm546_vm5 = vcmp.ne.s32.totalorder %v83_v21, 15 }
  0x17   :  { %665 = vmatprep.subr.mxu1 %v145_v29  ;;  %628 = vmatpush3.msra.mxu0 %v507_v28  ;;  %v116_v10 = vsel %vm114_vm0, %v111_v49, %v112_v7  ;;  %v115_v11 = vsel %vm114_vm0, %v112_v7, %v113_v48  ;;  %v132_v24 = vsel %vm131_vm3, %v129_v18, %v130_v19 }
  0x18   :  { %666 = vmatpush3.msra.mxu1 %v145_v29  ;;  %629 = vmatprep.subr.mxu0 %v506_v34  ;;  %v133_v25 = vsel %vm131_vm3, %v128_v17, %v129_v18 }
  0x19   :  { %667 = vmatprep.subr.mxu1 %v144_v35  ;;  %630 = vmatpush3.msra.mxu0 %v506_v34 }
  0x1a   :  { %668 = vmatpush3.msra.mxu1 %v144_v35  ;;  %631 = vmatprep.subr.mxu0 %v505_v36 }
  0x1b   :  { %669 = vmatprep.subr.mxu1 %v143_v37  ;;  %632 = vmatpush3.msra.mxu0 %v505_v36 }
  0x1c   :  { %670 = vmatpush3.msra.mxu1 %v143_v37  ;;  %633 = vmatprep.subr.mxu0 %v504_v42 }
  0x1d   :  { %671 = vmatprep.subr.mxu1 %v142_v43  ;;  %634 = vmatpush3.msra.mxu0 %v504_v42 }
  0x1e   :  { %672 = vmatpush3.msra.mxu1 %v142_v43  ;;  %635 = vmatprep.subr.mxu0 %v503_v44 }
  0x1f   :  { %673 = vmatprep.subr.mxu1 %v141_v45  ;;  %636 = vmatpush3.msra.mxu0 %v503_v44 }
  0x20   :  { %674 = vmatpush3.msra.mxu1 %v141_v45  ;;  %637 = vmatprep.subr.mxu0 %v502_v50 }
  0x21   :  { %675 = vmatprep.subr.mxu1 %v140_v51  ;;  %638 = vmatpush3.msra.mxu0 %v502_v50 }
  0x22   :  { %639 = vmatprep.mubr.f32.mxu0 %v896_v38  ;;  %676 = vmatpush3.msra.mxu1 %v140_v51  ;;  %v542_v38 = vld [vmem:[%s1044_s4] ss:$0 sm:$0xff] }
  0x23   :  { %677 = vmatprep.mubr.msk.f32.mxu1 %vm543_vm1, %v118_v52  ;;  %640 = vmatmul.mubr.f32.vlgmr.msra.gmra.mxu0 %v902_v41 }
  0x24   :  { %678 = vmatmul.mubr.f32.vlgmr.msra.gmra.mxu1 %v117_v53  ;;  %683 = vmatprep.subr.mxu0 %v537_v54 }
  0x25   :  { %721 = vmatprep.subr.mxu1 %v537_v54  ;;  %684 = vmatpush3.msra.mxu0 %v537_v54 }
  0x26   :  { %737 = vmatpush3.msra.mxu1 %v537_v54  ;;  %685 = vmatprep.subr.mxu0 %v536_v55 }
  0x27   :  { %722 = vmatprep.subr.mxu1 %v536_v55  ;;  %686 = vmatpush3.msra.mxu0 %v536_v55 }
  0x28   :  { %738 = vmatpush3.msra.mxu1 %v536_v55  ;;  %687 = vmatprep.subr.mxu0 %v535_v56 }
  0x29   :  { %723 = vmatprep.subr.mxu1 %v535_v56  ;;  %688 = vmatpush3.msra.mxu0 %v535_v56 }
  0x2a   :  { %739 = vmatpush3.msra.mxu1 %v535_v56  ;;  %689 = vmatprep.subr.mxu0 %v534_v57 }
  0x2b   :  { %724 = vmatprep.subr.mxu1 %v534_v57  ;;  %690 = vmatpush3.msra.mxu0 %v534_v57 }
  0x2c   :  { %740 = vmatpush3.msra.mxu1 %v534_v57  ;;  %691 = vmatprep.subr.mxu0 %v533_v59 }
  0x2d   :  { %725 = vmatprep.subr.mxu1 %v533_v59  ;;  %692 = vmatpush3.msra.mxu0 %v533_v59 }
  0x2e   :  { %741 = vmatpush3.msra.mxu1 %v533_v59  ;;  %693 = vmatprep.subr.mxu0 %v532_v61 }
  0x2f   :  { %726 = vmatprep.subr.mxu1 %v532_v61  ;;  %694 = vmatpush3.msra.mxu0 %v532_v61 }
  0x30   :  { %742 = vmatpush3.msra.mxu1 %v532_v61  ;;  %695 = vmatprep.subr.mxu0 %v531_v62 }
  0x31   :  { %727 = vmatprep.subr.mxu1 %v531_v62  ;;  %696 = vmatpush3.msra.mxu0 %v531_v62 }
  0x32   :  { %743 = vmatpush3.msra.mxu1 %v531_v62  ;;  %697 = vmatprep.subr.mxu0 %v530_v0 }
  0x33   :  { %728 = vmatprep.subr.mxu1 %v530_v0  ;;  %698 = vmatpush3.msra.mxu0 %v530_v0 }
  0x34   :  { %744 = vmatpush3.msra.mxu1 %v530_v0  ;;  %699 = vmatprep.subr.mxu0 %v529_v1 }
  0x35   :  { %729 = vmatprep.subr.mxu1 %v529_v1  ;;  %700 = vmatpush3.msra.mxu0 %v529_v1 }
  0x36   :  { %745 = vmatpush3.msra.mxu1 %v529_v1  ;;  %701 = vmatprep.subr.mxu0 %v528_v4 }
  0x37   :  { %730 = vmatprep.subr.mxu1 %v528_v4  ;;  %702 = vmatpush3.msra.mxu0 %v528_v4 }
  0x38   :  { %746 = vmatpush3.msra.mxu1 %v528_v4  ;;  %703 = vmatprep.subr.mxu0 %v527_v5 }
  0x39   :  { %731 = vmatprep.subr.mxu1 %v527_v5  ;;  %704 = vmatpush3.msra.mxu0 %v527_v5 }
  0x3a   :  { %747 = vmatpush3.msra.mxu1 %v527_v5  ;;  %705 = vmatprep.subr.mxu0 %v526_v8 }
  0x3b   :  { %732 = vmatprep.subr.mxu1 %v526_v8  ;;  %706 = vmatpush3.msra.mxu0 %v526_v8 }
  0x3c   :  { %748 = vmatpush3.msra.mxu1 %v526_v8  ;;  %707 = vmatprep.subr.mxu0 %v525_v9 }
  0x3d   :  { %733 = vmatprep.subr.mxu1 %v525_v9  ;;  %642 = vmatprep.mubr.f32.mxu0 %v969_v2 }
  0x3e   :  { %680 = vmatprep.mubr.msk.f32.mxu1 %vm544_vm2, %v116_v10  ;;  %708 = vmatpush3.msra.mxu0 %v525_v9 }
  0x3f   :  { %749 = vmatpush3.msra.mxu1 %v525_v9  ;;  %643 = vmatmul.mubr.f32.gmra.mxu0 %v898_v39 }
  0x40   :  { %681 = vmatmul.mubr.f32.gmra.mxu1 %v115_v11  ;;  %709 = vmatprep.subr.mxu0 %v524_v14 }
  0x41   :  { %734 = vmatprep.subr.mxu1 %v524_v14  ;;  %710 = vmatpush3.msra.mxu0 %v524_v14 }
  0x42   :  { %750 = vmatpush3.msra.mxu1 %v524_v14  ;;  %711 = vmatprep.subr.mxu0 %v523_v15 }
  0x43   :  { %735 = vmatprep.subr.mxu1 %v523_v15  ;;  %712 = vmatpush3.msra.mxu0 %v523_v15 }
  0x44   :  { %751 = vmatpush3.msra.mxu1 %v523_v15  ;;  %713 = vmatprep.subr.mxu0 %v522_v22 }
  0x45   :  { %736 = vmatprep.subr.mxu1 %v522_v22  ;;  %714 = vmatpush3.msra.mxu0 %v522_v22 }
  0x46   :  { %752 = vmatpush3.msra.mxu1 %v522_v22  ;;  %715 = vmatprep.mubr.f32.mxu0 %v134_v23 }
  0x47   :  { %718 = vmatprep.mubr.f32.mxu1 %v132_v24  ;;  %716 = vmatmul.mubr.msk.f32.vlgmr.msra.gmra.mxu0 %vm545_vm4, %v133_v25 }
  0x48   :  { %719 = vmatmul.mubr.msk.f32.vlgmr.msra.gmra.mxu1 %vm546_vm5, %v135_v26 }
  0xe3   :  { %v641_v27 = vpop.f32.mrf.mxu0 }
  0xe4   :  { %v679_v28 = vpop.f32.mrf.mxu1 }
  0xe5   :  { %v239_v29 = vpop.f32.mrf.mxu0  ;;  %v330_v35 = vadd.f32 %v679_v28, %v641_v27 }
  0xe6   :  { %v324_v30 = vpop.f32.mrf.mxu1 }
  0xe7   :  { %v325_v40 = vadd.f32 %v324_v30, %v239_v29 }
  0xff   :  { %v644_v31 = vpop.f32.mrf.mxu0 }
 0x100   :  { %v682_v32 = vpop.f32.mrf.mxu1 }
 0x101   :  { %v249_v33 = vpop.f32.mrf.mxu0  ;;  %v340_v36 = vadd.f32 %v682_v32, %v644_v31 }
 0x102   :  { %v334_v34 = vpop.f32.mrf.mxu1 }
 0x103   :  { %v335_v41 = vadd.f32 %v334_v34, %v249_v33 }
 0x107   :  { %v717_v37 = vpop.f32.mrf.mxu0 }
 0x108   :  { %v720_v39 = vpop.f32.mrf.mxu1  ;;  %v446_v42 = vadd.f32 %v717_v37, %v330_v35 }
 0x109   :  { %v448_v43 = vadd.f32 %v720_v39, %v340_v36  ;;  %v426_v44 = vpop.f32.mrf.mxu0 }
 0x10a   :  { %v436_v45 = vpop.f32.mrf.mxu1  ;;  %v457_v46 = vadd.f32 %v542_v38, %v446_v42  ;;  %v445_v48 = vadd.f32 %v426_v44, %v325_v40 }
 0x10b   :  { %v459_v47 = vadd.f32 %v542_v38, %v448_v43  ;;  %v447_v49 = vadd.f32 %v436_v45, %v335_v41 }
 0x10c   :  { %461 = vst [vmem:[%s1045_s5 + $0x8] sm:$0xff] %v457_v46  ;;  %v456_v50 = vadd.f32 %v542_v38, %v445_v48  ;;  %v475_v52 = vmul.f32 %v457_v46, %v457_v46 }
 0x10d   :  { %463 = vst [vmem:[%s1045_s5 + $0x18] sm:$0xff] %v459_v47  ;;  %v458_v51 = vadd.f32 %v542_v38, %v447_v49  ;;  %v477_v58 = vmul.f32 %v459_v47, %v459_v47 }
 0x10e   :  { %460 = vst [vmem:[%s1045_s5] sm:$0xff] %v456_v50  ;;  %v464_v53 = vadd.f32 %v457_v46, %v456_v50  ;;  %v474_v54 = vmul.f32 %v456_v50, %v456_v50 }
 0x10f   :  { %462 = vst [vmem:[%s1045_s5 + $0x10] sm:$0xff] %v458_v51  ;;  %v476_v57 = vmul.f32 %v458_v51, %v458_v51 }
 0x110   :  { %v478_v55 = vadd.f32 %v475_v52, %v474_v54  ;;  %v465_v56 = vadd.f32 %v464_v53, %v458_v51 }
 0x112   :  { %v466_v59 = vadd.f32 %v465_v56, %v459_v47  ;;  %v479_v60 = vadd.f32 %v478_v55, %v476_v57 }
 0x114   :  { %v467_v61 = vrot.slane %v466_v59, 4  ;;  %v480_v62 = vadd.f32 %v479_v60, %v477_v58 }
 0x116   :  { %v468_v63 = vadd.f32 %v467_v61, %v466_v59  ;;  %v481_v0 = vrot.slane %v480_v62, 4 }
 0x118   :  { %v469_v1 = vrot.slane %v468_v63, 2  ;;  %v482_v2 = vadd.f32 %v481_v0, %v480_v62 }
 0x11a   :  { %v470_v3 = vadd.f32 %v469_v1, %v468_v63  ;;  %v483_v4 = vrot.slane %v482_v2, 2 }
 0x11c   :  { %v471_v5 = vrot.slane %v470_v3, 1  ;;  %v484_v6 = vadd.f32 %v483_v4, %v482_v2 }
 0x11e   :  { %v472_v7 = vadd.f32 %v471_v5, %v470_v3  ;;  %v485_v8 = vrot.slane %v484_v6, 1 }
 0x120   :  { %473 = vst [vmem:[%s1046_s6] sm:$0x1] %v472_v7  ;;  %v486_v9 = vadd.f32 %v485_v8, %v484_v6 }
 0x122   :  { %487 = vst [vmem:[%s1047_s7] sm:$0x1] %v486_v9 }

// kernel: channel_reduce.5
= control target key start
LH: loop header
LB: loop body
LE: loop exit
PB: predicated region body
PF: predicated region fallthrough
CT: control target
= control target key end

     0   :  { %s178_s0 = inlined_call_operand.vmem [shape: f32[32,128], index: 0, kind: input, shape index: {}, may-alias: {0,6}]   ;;  %s179_s1 = inlined_call_operand.vmem [shape: f32[32,128], index: 1, kind: input, shape index: {}]   ;;  %s180_s2 = inlined_call_operand.vmem [shape: f32[1,128], index: 2, kind: input, shape index: {}]   ;;  %s181_s3 = inlined_call_operand.vmem [shape: f32[1,128], index: 3, kind: input, shape index: {}]   ;;  %s182_s4 = inlined_call_operand.vmem [shape: f32[1,128], index: 4, kind: input, shape index: {}]   ;;  %s183_s5 = inlined_call_operand.vmem [shape: f32[1,128], index: 5, kind: input, shape index: {}]   ;;  %s184_s6 = inlined_call_operand.vmem [shape: f32[32,128], index: 6, kind: output, shape index: {}, may-alias: {0,6}]  }
   0x1   :  { %v23_v0 = vld [vmem:[%s178_s0] sm:$0xff]  ;;  %v24_v7 = vld [vmem:[%s178_s0 + $0x8] sm:$0xff]  ;;  %v25_v9 = vld [vmem:[%s178_s0 + $0x10] sm:$0xff] }
   0x2   :  { %v91_v1 = vld [vmem:[%s180_s2] ss:$0 sm:$0xff]  ;;  %v50_v8 = vld [vmem:[%s179_s1 + $0x8] sm:$0xff]  ;;  %v51_v14 = vld [vmem:[%s179_s1 + $0x10] sm:$0xff] }
   0x3   :  { %v92_v2 = vld [vmem:[%s181_s3] ss:$0 sm:$0xff]  ;;  %v34_v3 = vmul.f32 %v91_v1, %v23_v0  ;;  %v35_v11 = vmul.f32 %v91_v1, %v24_v7  ;;  %v36_v13 = vmul.f32 %v91_v1, %v25_v9  ;;  %v26_v15 = vld [vmem:[%s178_s0 + $0x18] sm:$0xff] }
   0x4   :  { %v49_v4 = vld [vmem:[%s179_s1] sm:$0xff]  ;;  %v52_v16 = vld [vmem:[%s179_s1 + $0x18] sm:$0xff]  ;;  %v37_v19 = vmul.f32 %v91_v1, %v26_v15 }
   0x5   :  { %v93_v5 = vld [vmem:[%s182_s4] ss:$0 sm:$0xff]  ;;  %v45_v10 = vadd.f32 %v92_v2, %v34_v3  ;;  %v46_v22 = vadd.f32 %v92_v2, %v35_v11  ;;  %v47_v23 = vadd.f32 %v92_v2, %v36_v13 }
   0x6   :  { %v60_v6 = vmul.f32 %v93_v5, %v49_v4  ;;  %v61_v12 = vmul.f32 %v93_v5, %v50_v8  ;;  %v94_v17 = vld [vmem:[%s183_s5] ss:$0 sm:$0xff]  ;;  %v62_v18 = vmul.f32 %v93_v5, %v51_v14  ;;  %v63_v20 = vmul.f32 %v93_v5, %v52_v16 }
   0x7   :  { %v48_v24 = vadd.f32 %v92_v2, %v37_v19 }
   0x8   :  { %v64_v21 = vadd.f32 %v60_v6, %v45_v10  ;;  %v65_v26 = vadd.f32 %v61_v12, %v46_v22  ;;  %v66_v27 = vadd.f32 %v62_v18, %v47_v23 }
   0x9   :  { %v67_v28 = vadd.f32 %v63_v20, %v48_v24 }
   0xa   :  { %v75_v25 = vadd.f32 %v94_v17, %v64_v21  ;;  %v76_v30 = vadd.f32 %v94_v17, %v65_v26  ;;  %v77_v31 = vadd.f32 %v94_v17, %v66_v27 }
   0xb   :  { %v78_v32 = vadd.f32 %v94_v17, %v67_v28 }
   0xc   :  { %v79_v29 = vmax.f32 %v75_v25, 0.0  ;;  %v80_v33 = vmax.f32 %v76_v30, 0.0  ;;  %v81_v34 = vmax.f32 %v77_v31, 0.0 }
   0xd   :  { %v82_v35 = vmax.f32 %v78_v32, 0.0 }
   0xe   :  { %83 = vst [vmem:[%s184_s6] sm:$0xff] %v79_v29  ;;  %84 = vst [vmem:[%s184_s6 + $0x8] sm:$0xff] %v80_v33 }
   0xf   :  { %85 = vst [vmem:[%s184_s6 + $0x10] sm:$0xff] %v81_v34  ;;  %86 = vst [vmem:[%s184_s6 + $0x18] sm:$0xff] %v82_v35 }

</bundles_post_ra>
